<compile_context>
chip_gen: v5e
topology: v5e:2x2
jax: 0.10.0
libtpu: 0.0.40
codegen_flags: <defaults>
</compile_context>

<pallas_src>
import jax
import jax.numpy as jnp
from jax import lax
from jax.experimental import pallas as pl
from jax.experimental.pallas import tpu as pltpu

C_LEN = 4                         # number of continuous ('C') columns
N_DISC = 3                        # number of discrete columns fed to Dfc embeddings
V_MAX = 8                         # padded vocab size shared by all embedding tables
HIDDEN = 128
N_TOTAL_COLS = C_LEN + N_DISC + 1  # df columns include the target 'X'
K_FUSED = C_LEN + N_DISC * V_MAX   # 28
K_PAD = 32                         # fused contraction dim, padded

BATCH = 256
TILE_M = 128                       # batch tile per grid step


def model_kernel(xc_ref, xd_ref, wf_ref, bf_ref, w1_ref, b1_ref, w2_ref, b2_ref, o_ref):
    # xc_ref: [TM, K_PAD] f32 — continuous features in lanes [0, C_LEN), zeros elsewhere.
    # xd_ref: [TM, N_DISC] int32 — raw discrete codes in [0, V_MAX).
    xc = xc_ref[...]
    idx = xd_ref[...]

    # Build the fused LHS: add a one-hot for each discrete column at lane
    # offset C_LEN + j*V_MAX + code.  (3 tiny lane-broadcast compares; the
    # single [TM,32]x[32,128] matmul below replaces 4 separate tiny-K matmuls.)
    iota_k = lax.broadcasted_iota(jnp.int32, (TILE_M, K_PAD), 1)
    lhs = xc
    for j in range(N_DISC):
        comb = idx[:, j:j + 1] + (C_LEN + j * V_MAX)             # [TM, 1]
        lhs = lhs + (iota_k == comb).astype(jnp.float32)         # [TM, K_PAD]

    # Fused fc + embeddings (1/N_TOTAL_COLS and bfc already folded into wf/bf).
    out = jnp.dot(lhs, wf_ref[...],
                  preferred_element_type=jnp.float32) + bf_ref[...]   # [TM, H]

    # out = out + swish(fc1(out))
    h1 = jnp.dot(out, w1_ref[...],
                 preferred_element_type=jnp.float32) + b1_ref[...]    # [TM, H]
    out = out + h1 * jax.nn.sigmoid(h1)

    # fc2: N=1 matmul replaced by VPU multiply + lane reduction.
    y = jnp.sum(out * w2_ref[...], axis=-1, keepdims=True) + b2_ref[...]  # [TM, 1]
    o_ref[...] = y


def build_fused_params(raw):
    """Fold wfc + embedding tables into one [K_PAD, H] weight, scale by 1/n_cols."""
    inv = 1.0 / float(N_TOTAL_COLS)
    w_fused = jnp.zeros((K_PAD, HIDDEN), jnp.float32)
    w_fused = w_fused.at[:C_LEN].set(raw["wfc"])
    w_fused = w_fused.at[C_LEN:C_LEN + N_DISC * V_MAX].set(
        raw["emb"].reshape(N_DISC * V_MAX, HIDDEN))
    return {
        "wf": w_fused * inv,
        "bf": raw["bfc"] * inv,                 # [1, H]
        "w1": raw["w1"],                        # [H, H]
        "b1": raw["b1"],                        # [1, H]
        "w2": raw["w2"].reshape(1, HIDDEN),     # fc2 weight pre-transposed to [1, H]
        "b2": raw["b2"],                        # [1, 1]
    }


def model_forward(x_cont, x_disc, fused):
    B = x_cont.shape[0]
    assert B % TILE_M == 0
    grid = (B // TILE_M,)

    # Layout plumbing: place continuous features into the first C_LEN lanes of
    # the fused K_PAD-wide LHS slab (zeros elsewhere).
    xc_pad = jnp.pad(x_cont.astype(jnp.float32), ((0, 0), (0, K_PAD - C_LEN)))
    xd = x_disc.astype(jnp.int32)

    full = lambda shape: pl.BlockSpec(shape, lambda i: (0, 0))   # weights stay resident

    y = pl.pallas_call(
        model_kernel,
        out_shape=jax.ShapeDtypeStruct((B, 1), jnp.float32),
        grid=grid,
        in_specs=[
            pl.BlockSpec((TILE_M, K_PAD), lambda i: (i, 0)),     # xc (padded)
            pl.BlockSpec((TILE_M, N_DISC), lambda i: (i, 0)),    # x_disc codes
            full((K_PAD, HIDDEN)),                               # fused fc+emb weight
            full((1, HIDDEN)),                                   # fused bias
            full((HIDDEN, HIDDEN)),                              # w1
            full((1, HIDDEN)),                                   # b1
            full((1, HIDDEN)),                                   # w2 row
            full((1, 1)),                                        # b2
        ],
        out_specs=pl.BlockSpec((TILE_M, 1), lambda i: (i, 0)),
        compiler_params=pltpu.CompilerParams(
            dimension_semantics=("parallel",)),
    )(xc_pad, xd,
      fused["wf"], fused["bf"], fused["w1"], fused["b1"], fused["w2"], fused["b2"])
    return y[:, 0]                                               # [B] == fc2(out)[:, 0]


def init_raw_params(key):
    ks = jax.random.split(key, 7)
    s = 0.1
    return {
        "wfc": s * jax.random.normal(ks[0], (C_LEN, HIDDEN), jnp.float32),
        "bfc": s * jax.random.normal(ks[1], (1, HIDDEN), jnp.float32),
        "emb": s * jax.random.normal(ks[2], (N_DISC, V_MAX, HIDDEN), jnp.float32),
        "w1":  s * jax.random.normal(ks[3], (HIDDEN, HIDDEN), jnp.float32),
        "b1":  s * jax.random.normal(ks[4], (1, HIDDEN), jnp.float32),
        "w2":  s * jax.random.normal(ks[5], (HIDDEN, 1), jnp.float32),
        "b2":  s * jax.random.normal(ks[6], (1, 1), jnp.float32),
    }


def reference_forward(x_cont, x_disc, raw):
    acc = x_cont @ raw["wfc"] + raw["bfc"]
    for j in range(N_DISC):
        acc = acc + raw["emb"][j][x_disc[:, j]]
    out = acc / float(N_TOTAL_COLS)
    h1 = out @ raw["w1"] + raw["b1"]
    out = out + h1 * jax.nn.sigmoid(h1)
    return (out @ raw["w2"] + raw["b2"])[:, 0]


if __name__ == "__main__":
    key = jax.random.PRNGKey(0)
    k_par, k_xc, k_xd = jax.random.split(key, 3)

    raw = init_raw_params(k_par)
    fused = build_fused_params(raw)

    x_cont = jax.random.normal(k_xc, (BATCH, C_LEN), jnp.float32)
    x_disc = jax.random.randint(k_xd, (BATCH, N_DISC), 0, V_MAX, jnp.int32)

    out = model_forward(x_cont, x_disc, fused)
    jax.block_until_ready(out)
    assert out.shape == (BATCH,)

    ref = reference_forward(x_cont, x_disc, raw)
    assert jnp.allclose(out, ref, rtol=1e-3, atol=1e-3), "mismatch vs reference"

    print("KERNEL_OK")
</pallas_src>

<mosaic_0001>
module attributes {stable_mosaic.version = 11 : i64} {
  func.func @model_kernel(%arg0: i32, %arg1: memref<128x32xf32, #tpu.memory_space<vmem>>, %arg2: memref<128x3xi32, #tpu.memory_space<vmem>>, %arg3: memref<32x128xf32, #tpu.memory_space<vmem>>, %arg4: memref<1x128xf32, #tpu.memory_space<vmem>>, %arg5: memref<128x128xf32, #tpu.memory_space<vmem>>, %arg6: memref<1x128xf32, #tpu.memory_space<vmem>>, %arg7: memref<1x128xf32, #tpu.memory_space<vmem>>, %arg8: memref<1x1xf32, #tpu.memory_space<vmem>>, %arg9: memref<128x1xf32, #tpu.memory_space<vmem>>) attributes {dimension_semantics = [#tpu.dimension_semantics<parallel>], iteration_bounds = array<i64: 2>, scalar_prefetch = 0 : i64, scratch_operands = 0 : i64, tpu.core_type = #tpu.core_type<tc>, window_params = [{transform_indices = @transform_0, window_bounds = array<i64: 128, 32>}, {transform_indices = @transform_1, window_bounds = array<i64: 128, 3>}, {pipeline_mode = #tpu.pipeline_mode<synchronous>, transform_indices = @transform_2, window_bounds = array<i64: 32, 128>}, {pipeline_mode = #tpu.pipeline_mode<synchronous>, transform_indices = @transform_3, window_bounds = array<i64: 1, 128>}, {pipeline_mode = #tpu.pipeline_mode<synchronous>, transform_indices = @transform_4, window_bounds = array<i64: 128, 128>}, {pipeline_mode = #tpu.pipeline_mode<synchronous>, transform_indices = @transform_5, window_bounds = array<i64: 1, 128>}, {pipeline_mode = #tpu.pipeline_mode<synchronous>, transform_indices = @transform_6, window_bounds = array<i64: 1, 128>}, {pipeline_mode = #tpu.pipeline_mode<synchronous>, transform_indices = @transform_7, window_bounds = array<i64: 1, 1>}, {transform_indices = @transform_8, window_bounds = array<i64: 128, 1>}]} {
    %c0 = arith.constant 0 : index
    %c0_0 = arith.constant 0 : index
    %0 = vector.load %arg1[%c0, %c0_0] : memref<128x32xf32, #tpu.memory_space<vmem>>, vector<128x32xf32>
    %c0_1 = arith.constant 0 : index
    %c0_2 = arith.constant 0 : index
    %1 = vector.load %arg2[%c0_1, %c0_2] : memref<128x3xi32, #tpu.memory_space<vmem>>, vector<128x3xi32>
    %2 = tpu.iota {dimensions = array<i32: 1>} : vector<128x32xi32>
    %3 = vector.extract_strided_slice %1 {offsets = [0, 0], sizes = [128, 1], strides = [1, 1]} : vector<128x3xi32> to vector<128x1xi32>
    %c4_i32 = arith.constant 4 : i32
    %4 = vector.broadcast %c4_i32 : i32 to vector<128x1xi32>
    %5 = arith.addi %3, %4 : vector<128x1xi32>
    %6 = vector.broadcast %5 : vector<128x1xi32> to vector<128x32xi32>
    %7 = arith.cmpi eq, %2, %6 : vector<128x32xi32>
    %8 = arith.extui %7 : vector<128x32xi1> to vector<128x32xi32>
    %9 = arith.sitofp %8 : vector<128x32xi32> to vector<128x32xf32>
    %10 = arith.addf %0, %9 : vector<128x32xf32>
    %11 = vector.extract_strided_slice %1 {offsets = [0, 1], sizes = [128, 1], strides = [1, 1]} : vector<128x3xi32> to vector<128x1xi32>
    %c12_i32 = arith.constant 12 : i32
    %12 = vector.broadcast %c12_i32 : i32 to vector<128x1xi32>
    %13 = arith.addi %11, %12 : vector<128x1xi32>
    %14 = vector.broadcast %13 : vector<128x1xi32> to vector<128x32xi32>
    %15 = arith.cmpi eq, %2, %14 : vector<128x32xi32>
    %16 = arith.extui %15 : vector<128x32xi1> to vector<128x32xi32>
    %17 = arith.sitofp %16 : vector<128x32xi32> to vector<128x32xf32>
    %18 = arith.addf %10, %17 : vector<128x32xf32>
    %19 = vector.extract_strided_slice %1 {offsets = [0, 2], sizes = [128, 1], strides = [1, 1]} : vector<128x3xi32> to vector<128x1xi32>
    %c20_i32 = arith.constant 20 : i32
    %20 = vector.broadcast %c20_i32 : i32 to vector<128x1xi32>
    %21 = arith.addi %19, %20 : vector<128x1xi32>
    %22 = vector.broadcast %21 : vector<128x1xi32> to vector<128x32xi32>
    %23 = arith.cmpi eq, %2, %22 : vector<128x32xi32>
    %24 = arith.extui %23 : vector<128x32xi1> to vector<128x32xi32>
    %25 = arith.sitofp %24 : vector<128x32xi32> to vector<128x32xf32>
    %26 = arith.addf %18, %25 : vector<128x32xf32>
    %c0_3 = arith.constant 0 : index
    %c0_4 = arith.constant 0 : index
    %27 = vector.load %arg3[%c0_3, %c0_4] : memref<32x128xf32, #tpu.memory_space<vmem>>, vector<32x128xf32>
    %cst = arith.constant dense<0.000000e+00> : vector<128x128xf32>
    %28 = tpu.matmul %26, %27, %cst {dimension_numbers = #tpu.dot_dimension_numbers<[1], [0], [0], [1], [0, 0, 1, 1], [], []>} : vector<128x32xf32>, vector<32x128xf32>, vector<128x128xf32> -> vector<128x128xf32>
    %c0_5 = arith.constant 0 : index
    %c0_6 = arith.constant 0 : index
    %29 = vector.load %arg4[%c0_5, %c0_6] : memref<1x128xf32, #tpu.memory_space<vmem>>, vector<1x128xf32>
    %30 = vector.broadcast %29 : vector<1x128xf32> to vector<128x128xf32>
    %31 = arith.addf %28, %30 : vector<128x128xf32>
    %c0_7 = arith.constant 0 : index
    %c0_8 = arith.constant 0 : index
    %32 = vector.load %arg5[%c0_7, %c0_8] : memref<128x128xf32, #tpu.memory_space<vmem>>, vector<128x128xf32>
    %cst_9 = arith.constant dense<0.000000e+00> : vector<128x128xf32>
    %33 = tpu.matmul %31, %32, %cst_9 {dimension_numbers = #tpu.dot_dimension_numbers<[1], [0], [0], [1], [0, 0, 1, 1], [], []>} : vector<128x128xf32>, vector<128x128xf32>, vector<128x128xf32> -> vector<128x128xf32>
    %c0_10 = arith.constant 0 : index
    %c0_11 = arith.constant 0 : index
    %34 = vector.load %arg6[%c0_10, %c0_11] : memref<1x128xf32, #tpu.memory_space<vmem>>, vector<1x128xf32>
    %35 = vector.broadcast %34 : vector<1x128xf32> to vector<128x128xf32>
    %36 = arith.addf %33, %35 : vector<128x128xf32>
    %37 = arith.negf %36 : vector<128x128xf32>
    %38 = math.exp %37 : vector<128x128xf32>
    %cst_12 = arith.constant 1.000000e+00 : f32
    %39 = vector.broadcast %cst_12 : f32 to vector<128x128xf32>
    %40 = arith.addf %39, %38 : vector<128x128xf32>
    %41 = arith.divf %39, %40 : vector<128x128xf32>
    %42 = arith.mulf %36, %41 : vector<128x128xf32>
    %43 = arith.addf %31, %42 : vector<128x128xf32>
    %c0_13 = arith.constant 0 : index
    %c0_14 = arith.constant 0 : index
    %44 = vector.load %arg7[%c0_13, %c0_14] : memref<1x128xf32, #tpu.memory_space<vmem>>, vector<1x128xf32>
    %45 = vector.broadcast %44 : vector<1x128xf32> to vector<128x128xf32>
    %46 = arith.mulf %43, %45 : vector<128x128xf32>
    %cst_15 = arith.constant dense<0.000000e+00> : vector<128xf32>
    %47 = vector.multi_reduction <add>, %46, %cst_15 [1] : vector<128x128xf32> to vector<128xf32>
    %48 = vector.shape_cast %47 : vector<128xf32> to vector<128x1xf32>
    %c0_16 = arith.constant 0 : index
    %c0_17 = arith.constant 0 : index
    %49 = vector.load %arg8[%c0_16, %c0_17] : memref<1x1xf32, #tpu.memory_space<vmem>>, vector<1x1xf32>
    %50 = vector.broadcast %49 : vector<1x1xf32> to vector<128x1xf32>
    %51 = arith.addf %48, %50 : vector<128x1xf32>
    %c0_18 = arith.constant 0 : index
    %c0_19 = arith.constant 0 : index
    %52 = vector.load %arg9[%c0_18, %c0_19] : memref<128x1xf32, #tpu.memory_space<vmem>>, vector<128x1xf32>
    tpu.vector_store %arg9[%c0_18, %c0_19], %51 {strides = array<i32>} : memref<128x1xf32, #tpu.memory_space<vmem>>, vector<128x1xf32>,
    return
  }
  func.func @transform_0(%arg0: i32) -> (i32, i32) {
    %c0_i32 = arith.constant 0 : i32
    %c0_i32_0 = arith.constant 0 : i32
    return %arg0, %c0_i32 : i32, i32
  }
  func.func @transform_1(%arg0: i32) -> (i32, i32) {
    %c0_i32 = arith.constant 0 : i32
    %c0_i32_0 = arith.constant 0 : i32
    return %arg0, %c0_i32 : i32, i32
  }
  func.func @transform_2(%arg0: i32) -> (i32, i32) {
    %c0_i32 = arith.constant 0 : i32
    %c0_i32_0 = arith.constant 0 : i32
    %c0_i32_1 = arith.constant 0 : i32
    return %c0_i32, %c0_i32_0 : i32, i32
  }
  func.func @transform_3(%arg0: i32) -> (i32, i32) {
    %c0_i32 = arith.constant 0 : i32
    %c0_i32_0 = arith.constant 0 : i32
    %c0_i32_1 = arith.constant 0 : i32
    return %c0_i32, %c0_i32_0 : i32, i32
  }
  func.func @transform_4(%arg0: i32) -> (i32, i32) {
    %c0_i32 = arith.constant 0 : i32
    %c0_i32_0 = arith.constant 0 : i32
    %c0_i32_1 = arith.constant 0 : i32
    return %c0_i32, %c0_i32_0 : i32, i32
  }
  func.func @transform_5(%arg0: i32) -> (i32, i32) {
    %c0_i32 = arith.constant 0 : i32
    %c0_i32_0 = arith.constant 0 : i32
    %c0_i32_1 = arith.constant 0 : i32
    return %c0_i32, %c0_i32_0 : i32, i32
  }
  func.func @transform_6(%arg0: i32) -> (i32, i32) {
    %c0_i32 = arith.constant 0 : i32
    %c0_i32_0 = arith.constant 0 : i32
    %c0_i32_1 = arith.constant 0 : i32
    return %c0_i32, %c0_i32_0 : i32, i32
  }
  func.func @transform_7(%arg0: i32) -> (i32, i32) {
    %c0_i32 = arith.constant 0 : i32
    %c0_i32_0 = arith.constant 0 : i32
    %c0_i32_1 = arith.constant 0 : i32
    return %c0_i32, %c0_i32_0 : i32, i32
  }
  func.func @transform_8(%arg0: i32) -> (i32, i32) {
    %c0_i32 = arith.constant 0 : i32
    %c0_i32_0 = arith.constant 0 : i32
    return %arg0, %c0_i32 : i32, i32
  }
}

</mosaic_0001>

<bundles_post_ra>
// kernel: tpu_custom_call.1
= control target key start
LH: loop header
LB: loop body
LE: loop exit
PB: predicated region body
PF: predicated region fallthrough
CT: control target
= control target key end

     0   :  { %s1756_s29 = smov 0   ;;  %s2293_s0 = inlined_call_operand.vmem [shape: f32[256,32], index: 0, kind: input, shape index: {}]   ;;  %s2294_s1 = inlined_call_operand.vmem [shape: s32[256,3], index: 1, kind: input, shape index: {}]   ;;  %s2295_s2 = inlined_call_operand.vmem [shape: f32[32,128], index: 2, kind: input, shape index: {}]   ;;  %s2296_s3 = inlined_call_operand.vmem [shape: f32[1,128], index: 3, kind: input, shape index: {}]   ;;  %s2297_s4 = inlined_call_operand.vmem [shape: f32[128,128], index: 4, kind: input, shape index: {}]   ;;  %s2298_s5 = inlined_call_operand.vmem [shape: f32[1,128], index: 5, kind: input, shape index: {}]   ;;  %s2299_s6 = inlined_call_operand.vmem [shape: f32[1,128], index: 6, kind: input, shape index: {}]   ;;  %s2300_s7 = inlined_call_operand.<no memory space> [shape: f32[1,1], index: 7, kind: input, shape index: {}]   ;;  %s2301_s8 = inlined_call_operand.vmem [shape: f32[256,1], index: 8, kind: output, shape index: {}]  }
   0x1   :  { %v13_v0 = vstv %s2300_s7 }
   0x2   :  { %14 = vst [vmem:[#allocation2] sm:$0x1] %v13_v0 }
   0x3 LB: > { %s1451_s30 = sadd.s32 4294967295, %s1702_s29   ;;  %p1455_p0 = scmp.ge.s32.totalorder %s1702_s29, 1  ;;  %s1702_s29 = sphi %s1756_s29, %s20_s29  }
   0x4   : > { %p276_p1 = scmp.lt.s32.totalorder %s1702_s29, 3 }
   0x6   : > { %p277_p2 = pnand %p1455_p0, %p276_p1 }
   0x7   : > { %s1456_s9 = sshll.u32 (!%p277_p2), %s1451_s30, 4 }
   0x8   : > { %280 = sbr.rel (%p277_p2) target bundleno = 715 (0x2cb), region = 52  ;;  %p316_p3 = scmp.lt.s32.totalorder (!%p277_p2), %s1456_s9, 31 }
   0xd   : > { %v1704_v1 = vmov 2   ;;  %v1705_v2 = vmov 0   ;;  %v1706_v3 = vmov 1   ;;  %s2303_s9 = smov (!%p316_p3, %s1456_s9), 31  ;;  %v754_v48 = vld [vmem:[%s2295_s2 + $0x18] sm:$0xff]  ;;  %v753_v51 = vld [vmem:[%s2295_s2 + $0x10] sm:$0xff]  ;;  %v365_v61 = vlaneseq }
   0xe   : > { %1594 = vset.pattern.permute.xlu1 %v1704_v1  ;;  %1592 = vset.pattern.permute.xlu0 %v1705_v2  ;;  %s1767_s7 = sshll.u32 %s2303_s9, 3  ;;  %v752_v53 = vld [vmem:[%s2295_s2 + $0x8] sm:$0xff]  ;;  %v751_v54 = vld [vmem:[%s2295_s2] sm:$0xff]  ;;  %vm759_vm4 = vcmask 261120  }
   0xf   : > { %1596 = vset.pattern.permute.xlu2 %v1706_v3  ;;  %s1773_s12 = scalar_lea.vmem %s2294_s1, %s1767_s7  ;;  %820 = vmatpush.msra.mxu0 %v754_v48  ;;  %v1836_v0 = vand.u32 127, %v365_v61  ;;  %s1843_s23 = scalar_lea.vmem %s2293_s0, %s1767_s7 }
  0x10   : > { %v349_v4 = vld [vmem:[%s1773_s12] sm:$0xff]  ;;  %v350_v7 = vld [vmem:[%s1773_s12 + $0x8] sm:$0xff]  ;;  %v351_v12 = vld [vmem:[%s1773_s12 + $0x10] sm:$0xff]  ;;  %1544 = vmatpush.msra.mxu3 %v754_v48  ;;  %s2206_s22 = scalar_lea.vmem %s2301_s8, %s1767_s7 }
  0x11   : > { %v623_v5 = vadd.s32 20, %v349_v4  ;;  %v367_v6 = vadd.s32 4, %v349_v4  ;;  %v496_v8 = vadd.s32 12, %v350_v7  ;;  %v368_v9 = vadd.s32 4, %v350_v7  ;;  %v352_v16 = vld [vmem:[%s1773_s12 + $0x18] sm:$0xff]  ;;  %v353_v17 = vld [vmem:[%s1773_s12 + $0x20] sm:$0xff]  ;;  %821 = vmatpush.msra.mxu0 %v753_v51 }
  0x12   : > { %v495_v10 = vadd.s32 12, %v349_v4  ;;  %v624_v11 = vadd.s32 20, %v350_v7  ;;  %v369_v13 = vadd.s32 4, %v351_v12  ;;  %v625_v14 = vadd.s32 20, %v351_v12  ;;  %v356_v21 = vld [vmem:[%s1773_s12 + $0x38] sm:$0xff]  ;;  %v355_v25 = vld [vmem:[%s1773_s12 + $0x30] sm:$0xff]  ;;  %1545 = vmatpush.msra.mxu3 %v753_v51 }
  0x13   : > { %640 = vperm.xlu1 %1594, %v623_v5   ;;  %384 = vperm.xlu0 %1592, %v367_v6   ;;  %v497_v15 = vadd.s32 12, %v351_v12  ;;  %v370_v18 = vadd.s32 4, %v352_v16  ;;  %v499_v19 = vadd.s32 12, %v353_v17  ;;  %v498_v20 = vadd.s32 12, %v352_v16  ;;  %v354_v27 = vld [vmem:[%s1773_s12 + $0x28] sm:$0xff]  ;;  %v360_v34 = vld [vmem:[%s1773_s12 + $0x58] sm:$0xff] }
  0x14   : > { %515 = vperm.xlu2 %1596, %v496_v8   ;;  %v626_v22 = vadd.s32 20, %v352_v16  ;;  %v502_v23 = vadd.s32 12, %v356_v21  ;;  %v371_v24 = vadd.s32 4, %v353_v17  ;;  %v627_v26 = vadd.s32 20, %v353_v17  ;;  %v1796_v36 = vld [vmem:[%s1773_s12 + $0x48] sm:$0xff]  ;;  %v359_v38 = vld [vmem:[%s1773_s12 + $0x50] sm:$0xff]  ;;  %822 = vmatpush.msra.mxu0 %v752_v53 }
  0x15   : > { %v373_v28 = vadd.s32 4, %v355_v25  ;;  %v372_v29 = vadd.s32 4, %v354_v27  ;;  %v500_v30 = vadd.s32 12, %v354_v27  ;;  %v628_v31 = vadd.s32 20, %v354_v27  ;;  %v361_v43 = vld [vmem:[%s1773_s12 + $0x60] sm:$0xff]  ;;  %1546 = vmatpush.msra.mxu3 %v752_v53  ;;  %v362_v56 = vld [vmem:[%s1773_s12 + $0x68] sm:$0xff] }
  0x16   : > { %v501_v32 = vadd.s32 12, %v355_v25  ;;  %v629_v33 = vadd.s32 20, %v355_v25  ;;  %v378_v35 = vadd.s32 4, %v360_v34  ;;  %v374_v37 = vadd.s32 4, %v356_v21  ;;  %v357_v46 = vld [vmem:[%s1773_s12 + $0x40] sm:$0xff]  ;;  %823 = vmatpush.msra.mxu0 %v751_v54  ;;  %v334_v17 = vld [vmem:[%s1843_s23 + $0x8] sm:$0xff] }
  0x17   : > { %v376_v39 = vadd.s32 4, %v1796_v36  ;;  %v377_v40 = vadd.s32 4, %v359_v38  ;;  %v505_v41 = vadd.s32 12, %v359_v38  ;;  %v630_v42 = vadd.s32 20, %v356_v21  ;;  %1547 = vmatpush.msra.mxu3 %v751_v54  ;;  %v333_v8 = vld [vmem:[%s1843_s23] sm:$0xff] }
  0x18   : > { %v507_v44 = vadd.s32 12, %v361_v43  ;;  %v633_v45 = vadd.s32 20, %v359_v38  ;;  %v375_v47 = vadd.s32 4, %v357_v46  ;;  %v503_v49 = vadd.s32 12, %v357_v46 }
  0x19   : > { %v506_v52 = vadd.s32 12, %v360_v34  ;;  %v631_v55 = vadd.s32 20, %v357_v46  ;;  %v636_v58 = vadd.s32 20, %v362_v56  ;;  %v634_v59 = vadd.s32 20, %v360_v34 }
  0x1a   : > { %v379_v60 = vadd.s32 4, %v361_v43  ;;  %v504_v63 = vadd.s32 12, %v1796_v36  ;;  %v632_v6 = vadd.s32 20, %v1796_v36 }
  0x1b   : > { %1595 = vset.pattern.permute.xlu1 %v1705_v2  ;;  %1593 = vset.pattern.permute.xlu0 %v1706_v3 }
  0x1c   : > { %387 = vperm.xlu1 %1595, %v368_v9   ;;  %512 = vperm.xlu0 %1593, %v495_v10   ;;  %v1707_v9 = vmov 0.0  }
  0x1d   : > { %1597 = vset.pattern.permute.xlu2 %v1704_v1 }
  0x1e   : > { %643 = vperm.xlu2 %1597, %v624_v11   ;;  %v1852_v11 = vld [vmem:[%s1773_s12 + $0x78] sm:$0xff] }
  0x1f   : > { %v510_v12 = vadd.s32 12, %v1852_v11 }
  0x24   : > { %390 = vperm.xlu1 %1595, %v369_v13   ;;  %1599 = vset.pattern.permute.xlu0 %v1704_v1  ;;  %v635_v13 = vadd.s32 20, %v361_v43  ;;  %v336_v43 = vld [vmem:[%s1843_s23 + $0x18] sm:$0xff] }
  0x25   : > { %646 = vperm.xlu0 %1599, %v625_v14  }
  0x26   : > { %1598 = vset.pattern.permute.xlu2 %v1706_v3 }
  0x27   : > { %518 = vperm.xlu2 %1598, %v497_v15  }
  0x2c   : > { %393 = vperm.xlu1 %1595, %v370_v18  }
  0x2d   : > { %1602 = vset.pattern.permute.xlu0 %v1706_v3 }
  0x2e   : > { %524 = vperm.xlu0 %1602, %v499_v19  }
  0x2f   : > { %521 = vperm.xlu2 %1598, %v498_v20  }
  0x34   : > { %1600 = vset.pattern.permute.xlu1 %v1704_v1 }
  0x35   : > { %649 = vperm.xlu1 %1600, %v626_v22   ;;  %v380_v22 = vadd.s32 4, %v362_v56 }
  0x36   : > { %533 = vperm.xlu0 %1602, %v502_v23  }
  0x37   : > { %1601 = vset.pattern.permute.xlu2 %v1705_v2 }
  0x38   : > { %396 = vperm.xlu2 %1601, %v371_v24  }
  0x3d   : > { %652 = vperm.xlu1 %1600, %v627_v26   ;;  %v508_v26 = vadd.s32 12, %v362_v56 }
  0x3e   : > { %1607 = vset.pattern.permute.xlu0 %v1705_v2 }
  0x3f   : > { %402 = vperm.xlu0 %1607, %v373_v28  }
  0x40   : > { %399 = vperm.xlu2 %1601, %v372_v29  }
  0x45   : > { %1603 = vset.pattern.permute.xlu1 %v1706_v3 }
  0x46   : > { %527 = vperm.xlu1 %1603, %v500_v30   ;;  %v363_v30 = vld [vmem:[%s1773_s12 + $0x70] sm:$0xff] }
  0x47   : > { %417 = vperm.xlu0 %1607, %v378_v35   ;;  %v381_v35 = vadd.s32 4, %v363_v30 }
  0x48   : > { %1604 = vset.pattern.permute.xlu2 %v1704_v1 }
  0x49   : > { %655 = vperm.xlu2 %1604, %v628_v31  }
  0x4e   : > { %530 = vperm.xlu1 %1603, %v501_v32   ;;  %v335_v32 = vld [vmem:[%s1843_s23 + $0x10] sm:$0xff] }
  0x4f   : > { %411 = vperm.xlu0 %1607, %v376_v39  }
  0x51   : > { %658 = vperm.xlu2 %1604, %v629_v33  }
  0x56   : > { %1605 = vset.pattern.permute.xlu1 %v1705_v2 }
  0x57   : > { %405 = vperm.xlu1 %1605, %v374_v37   ;;  %1618 = vset.pattern.permute.xlu0 %v1706_v3 }
  0x58   : > { %548 = vperm.xlu0 %1618, %v507_v44  }
  0x59   : > { %1606 = vset.pattern.permute.xlu2 %v1705_v2 }
  0x5a   : > { %414 = vperm.xlu2 %1606, %v377_v40   ;;  %v509_v40 = vadd.s32 12, %v363_v30 }
  0x5f   : > { %1608 = vset.pattern.permute.xlu1 %v1706_v3 }
  0x60   : > { %542 = vperm.xlu1 %1608, %v505_v41   ;;  %1623 = vset.pattern.permute.xlu0 %v1704_v1 }
  0x61   : > { %679 = vperm.xlu0 %1623, %v636_v58  }
  0x62   : > { %1609 = vset.pattern.permute.xlu2 %v1704_v1 }
  0x63   : > { %661 = vperm.xlu2 %1609, %v630_v42  }
  0x68   : > { %1610 = vset.pattern.permute.xlu1 %v1704_v1 }
  0x69   : > { %670 = vperm.xlu1 %1610, %v633_v45   ;;  %1626 = vset.pattern.permute.xlu0 %v1706_v3 }
  0x6a   : > { %557 = vperm.xlu0 %1626, %v510_v12  }
  0x6b   : > { %1611 = vset.pattern.permute.xlu2 %v1705_v2 }
  0x6c   : > { %408 = vperm.xlu2 %1611, %v375_v47   ;;  %v637_v47 = vadd.s32 20, %v363_v30 }
  0x6e   : > { %v1812_v50 = vpop.permute.xlu2 %515 }
  0x6f   : > { %vm560_vm5 = vcmp.eq.s32.totalorder %v1836_v0, %v1812_v50  ;;  %v382_v50 = vadd.s32 4, %v1852_v11 }
  0x70   : > { %v1479_v27 = vsel %vm560_vm5, 1.0, %v1707_v9 }
  0x71   : > { %1612 = vset.pattern.permute.xlu1 %v1706_v3 }
  0x72   : > { %536 = vperm.xlu1 %1612, %v503_v49   ;;  %1627 = vset.pattern.permute.xlu0 %v1704_v1 }
  0x74   : > { %1613 = vset.pattern.permute.xlu2 %v1706_v3 }
  0x75   : > { %545 = vperm.xlu2 %1613, %v506_v52   ;;  %v337_v52 = vld [vmem:[%s1843_s23 + $0x20] sm:$0xff] }
  0x78   : > { %v1827_v57 = vpop.permute.xlu2 %643 }
  0x79   : > { %vm688_vm6 = vcmp.eq.s32.totalorder %v1836_v0, %v1827_v57 }
  0x7a   : > { %1614 = vset.pattern.permute.xlu1 %v1704_v1  ;;  %v1495_v31 = vsel %vm688_vm6, 1.0, %v1707_v9 }
  0x7b   : > { %664 = vperm.xlu1 %1614, %v631_v55  }
  0x7d   : > { %1615 = vset.pattern.permute.xlu2 %v1704_v1 }
  0x7e   : > { %673 = vperm.xlu2 %1615, %v634_v59   ;;  %v638_v59 = vadd.s32 20, %v1852_v11 }
  0x81   : > { %v1831_v62 = vpop.permute.xlu2 %518 }
  0x82   : > { %vm561_vm8 = vcmp.eq.s32.totalorder %v1836_v0, %v1831_v62 }
  0x83   : > { %1616 = vset.pattern.permute.xlu1 %v1705_v2  ;;  %v1480_v39 = vsel %vm561_vm8, 1.0, %v1707_v9 }
  0x84   : > { %420 = vperm.xlu1 %1616, %v379_v60  }
  0x85   : > { %v641_v4 = vpop.permute.xlu1 %640  ;;  %v385_v5 = vpop.permute.xlu0 %384 }
  0x86   : > { %1617 = vset.pattern.permute.xlu2 %v1706_v3  ;;  %vm431_vm0 = vcmp.eq.s32.totalorder %v1836_v0, %v385_v5  ;;  %vm687_vm1 = vcmp.eq.s32.totalorder %v1836_v0, %v641_v4 }
  0x87   : > { %539 = vperm.xlu2 %1617, %v504_v63   ;;  %v1462_v10 = vsel %vm431_vm0, 1.0, %v1707_v9  ;;  %v1494_v21 = vsel %vm687_vm1, 1.0, %v1707_v9 }
  0x88   : > { %v479_v14 = vadd.f32 %v1462_v10, %v333_v8 }
  0x89   : > { %v1847_v7 = vpop.permute.xlu2 %521 }
  0x8a   : > { %vm562_vm11 = vcmp.eq.s32.totalorder %v1836_v0, %v1847_v7 }
  0x8b   : > { %v1481_v51 = vsel %vm562_vm11, 1.0, %v1707_v9 }
  0x8c   : > { %1619 = vset.pattern.permute.xlu1 %v1704_v1 }
  0x8d   : > { %667 = vperm.xlu1 %1619, %v632_v6   ;;  %v338_v6 = vld [vmem:[%s1843_s23 + $0x28] sm:$0xff] }
  0x8e   : > { %v388_v15 = vpop.permute.xlu1 %387  ;;  %v513_v16 = vpop.permute.xlu0 %512 }
  0x8f   : > { %vm432_vm2 = vcmp.eq.s32.totalorder %v1836_v0, %v388_v15  ;;  %vm559_vm3 = vcmp.eq.s32.totalorder %v1836_v0, %v513_v16  ;;  %1620 = vset.pattern.permute.xlu2 %v1704_v1  ;;  %v339_v15 = vld [vmem:[%s1843_s23 + $0x30] sm:$0xff] }
  0x90   : > { %v1463_v18 = vsel %vm432_vm2, 1.0, %v1707_v9  ;;  %v1478_v19 = vsel %vm559_vm3, 1.0, %v1707_v9  ;;  %676 = vperm.xlu2 %1620, %v635_v13  }
  0x91   : > { %v607_v20 = vadd.f32 %v1478_v19, %v479_v14  ;;  %v480_v24 = vadd.f32 %v1463_v18, %v334_v17 }
  0x92   : > { %v397_v23 = vpop.permute.xlu2 %396 }
  0x93   : > { %v735_v25 = vadd.f32 %v1494_v21, %v607_v20  ;;  %v608_v29 = vadd.f32 %v1479_v27, %v480_v24  ;;  %vm435_vm12 = vcmp.eq.s32.totalorder %v1836_v0, %v397_v23 }
  0x94   : > { %v1466_v53 = vsel %vm435_vm12, 1.0, %v1707_v9 }
  0x95   : > { %1621 = vset.pattern.permute.xlu1 %v1705_v2  ;;  %1510 = vmatmul.msk.f32.vlgmr.msra.gmra.mxu0 %vm759_vm4, %v735_v25  ;;  %v736_v38 = vadd.f32 %v1495_v31, %v608_v29  ;;  %v483_v57 = vadd.f32 %v1466_v53, %v337_v52  ;;  %v884_v52 = vld [vmem:[%s2297_s4 + $0x58] sm:$0xff] }
  0x96   : > { %423 = vperm.xlu1 %1621, %v380_v22   ;;  %v391_v28 = vpop.permute.xlu1 %390 }
  0x97   : > { %vm433_vm7 = vcmp.eq.s32.totalorder %v1836_v0, %v391_v28  ;;  %v647_v34 = vpop.permute.xlu0 %646 }
  0x98   : > { %v1464_v33 = vsel %vm433_vm7, 1.0, %v1707_v9  ;;  %1622 = vset.pattern.permute.xlu2 %v1706_v3  ;;  %vm689_vm9 = vcmp.eq.s32.totalorder %v1836_v0, %v647_v34 }
  0x99   : > { %551 = vperm.xlu2 %1622, %v508_v26   ;;  %v481_v37 = vadd.f32 %v1464_v33, %v335_v32  ;;  %v1496_v42 = vsel %vm689_vm9, 1.0, %v1707_v9  ;;  %v340_v26 = vld [vmem:[%s1843_s23 + $0x38] sm:$0xff] }
  0x9a   : > { %v400_v36 = vpop.permute.xlu2 %399 }
  0x9b   : > { %v609_v3 = vadd.f32 %v1480_v39, %v481_v37  ;;  %vm436_vm0 = vcmp.eq.s32.totalorder %v1836_v0, %v400_v36 }
  0x9c   : > { %v1467_v7 = vsel %vm436_vm0, 1.0, %v1707_v9 }
  0x9d   : > { %1511 = vmatmul.msk.f32.gmra.mxu0 %vm759_vm4, %v736_v38  ;;  %v737_v46 = vadd.f32 %v1496_v42, %v609_v3  ;;  %v484_v11 = vadd.f32 %v1467_v7, %v338_v6  ;;  %v343_v38 = vld [vmem:[%s1843_s23 + $0x50] sm:$0xff]  ;;  %v344_v3 = vld [vmem:[%s1843_s23 + $0x58] sm:$0xff]  ;;  %v877_v6 = vld [vmem:[%s2297_s4 + $0x20] sm:$0xff] }
  0x9e   : > { %426 = vperm.xlu1 %1621, %v381_v35   ;;  %v394_v41 = vpop.permute.xlu1 %393  ;;  %v888_v35 = vld [vmem:[%s2297_s4 + $0x78] sm:$0xff] }
  0x9f   : > { %vm434_vm10 = vcmp.eq.s32.totalorder %v1836_v0, %v394_v41  ;;  %893 = vmatpush.msra.mxu1 %v888_v35  ;;  %1548 = vmatpush.msra.mxu2 %v888_v35 }
  0xa0   : > { %v1465_v44 = vsel %vm434_vm10, 1.0, %v1707_v9  ;;  %v525_v45 = vpop.permute.xlu0 %524  ;;  %1549 = vmatpush.msrb.mxu3 %v888_v35 }
  0xa1   : > { %554 = vperm.xlu2 %1622, %v509_v40   ;;  %v482_v49 = vadd.f32 %v1465_v44, %v336_v43  ;;  %vm563_vm14 = vcmp.eq.s32.totalorder %v1836_v0, %v525_v45  ;;  %v887_v40 = vld [vmem:[%s2297_s4 + $0x70] sm:$0xff]  ;;  %v886_v43 = vld [vmem:[%s2297_s4 + $0x68] sm:$0xff] }
  0xa2   : > { %v1482_v58 = vsel %vm563_vm14, 1.0, %v1707_v9  ;;  %894 = vmatpush.msra.mxu1 %v887_v40  ;;  %1550 = vmatpush.msra.mxu2 %v887_v40 }
  0xa3   : > { %v656_v48 = vpop.permute.xlu2 %655  ;;  %v610_v55 = vadd.f32 %v1481_v51, %v482_v49  ;;  %v611_v62 = vadd.f32 %v1482_v58, %v483_v57  ;;  %1551 = vmatpush.msrb.mxu3 %v887_v40  ;;  %v882_v57 = vld [vmem:[%s2297_s4 + $0x48] sm:$0xff] }
  0xa4   : > { %vm692_vm1 = vcmp.eq.s32.totalorder %v1836_v0, %v656_v48  ;;  %895 = vmatpush.msra.mxu1 %v886_v43  ;;  %1552 = vmatpush.msra.mxu2 %v886_v43 }
  0xa5   : > { %1512 = vmatmul.msk.f32.gmra.mxu0 %vm759_vm4, %v737_v46  ;;  %v1499_v12 = vsel %vm692_vm1, 1.0, %v1707_v9  ;;  %v885_v46 = vld [vmem:[%s2297_s4 + $0x60] sm:$0xff]  ;;  %1553 = vmatpush.msrb.mxu3 %v886_v43 }
  0xa6   : > { %1624 = vset.pattern.permute.xlu1 %v1704_v1  ;;  %896 = vmatpush.msra.mxu1 %v885_v46 }
  0xa7   : > { %682 = vperm.xlu1 %1624, %v637_v47   ;;  %v650_v54 = vpop.permute.xlu1 %649  ;;  %1554 = vmatpush.msra.mxu2 %v885_v46 }
  0xa8   : > { %vm690_vm13 = vcmp.eq.s32.totalorder %v1836_v0, %v650_v54  ;;  %v534_v61 = vpop.permute.xlu0 %533  ;;  %1555 = vmatpush.msrb.mxu3 %v885_v46  ;;  %897 = vmatpush.msra.mxu1 %v884_v52  ;;  %v883_v54 = vld [vmem:[%s2297_s4 + $0x50] sm:$0xff]  ;;  %v2031_v46 = vld [vmem:[%s2296_s3] ss:$0 sm:$0xff] }
  0xa9   : > { %v1497_v56 = vsel %vm690_vm13, 1.0, %v1707_v9  ;;  %1625 = vset.pattern.permute.xlu2 %v1705_v2  ;;  %vm566_vm7 = vcmp.eq.s32.totalorder %v1836_v0, %v534_v61  ;;  %1556 = vmatpush.msra.mxu2 %v884_v52  ;;  %v879_v61 = vld [vmem:[%s2297_s4 + $0x30] sm:$0xff] }
  0xaa   : > { %v738_v1 = vadd.f32 %v1497_v56, %v610_v55  ;;  %429 = vperm.xlu2 %1625, %v382_v50   ;;  %v1485_v28 = vsel %vm566_vm7, 1.0, %v1707_v9  ;;  %1557 = vmatpush.msrb.mxu3 %v884_v52 }
  0xab   : > { %v659_v60 = vpop.permute.xlu2 %658  ;;  %898 = vmatpush.msra.mxu1 %v883_v54  ;;  %1558 = vmatpush.msra.mxu2 %v883_v54 }
  0xac   : > { %vm693_vm5 = vcmp.eq.s32.totalorder %v1836_v0, %v659_v60  ;;  %1559 = vmatpush.msrb.mxu3 %v883_v54  ;;  %v880_v60 = vld [vmem:[%s2297_s4 + $0x38] sm:$0xff] }
  0xad   : > { %1513 = vmatmul.msk.f32.gmra.mxu0 %vm759_vm4, %v738_v1  ;;  %v1500_v23 = vsel %vm693_vm5, 1.0, %v1707_v9  ;;  %899 = vmatpush.msra.mxu1 %v882_v57  ;;  %v881_v1 = vld [vmem:[%s2297_s4 + $0x40] sm:$0xff] }
  0xae   : > { %1560 = vmatpush.msra.mxu2 %v882_v57  ;;  %1561 = vmatpush.msrb.mxu3 %v882_v57  ;;  %v348_v57 = vld [vmem:[%s1843_s23 + $0x78] sm:$0xff] }
  0xaf   : > { %685 = vperm.xlu1 %1624, %v638_v59   ;;  %v653_v63 = vpop.permute.xlu1 %652  ;;  %900 = vmatpush.msra.mxu1 %v881_v1 }
  0xb0   : > { %vm691_vm15 = vcmp.eq.s32.totalorder %v1836_v0, %v653_v63  ;;  %1562 = vmatpush.msra.mxu2 %v881_v1  ;;  %1563 = vmatpush.msrb.mxu3 %v881_v1 }
  0xb1   : > { %v1498_v4 = vsel %vm691_vm15, 1.0, %v1707_v9  ;;  %v403_v8 = vpop.permute.xlu0 %402  ;;  %901 = vmatpush.msra.mxu1 %v880_v60 }
  0xb2   : > { %v739_v2 = vadd.f32 %v1498_v4, %v611_v62  ;;  %vm437_vm3 = vcmp.eq.s32.totalorder %v1836_v0, %v403_v8  ;;  %1564 = vmatpush.msra.mxu2 %v880_v60  ;;  %1565 = vmatpush.msrb.mxu3 %v880_v60  ;;  %v341_v62 = vld [vmem:[%s1843_s23 + $0x40] sm:$0xff]  ;;  %v878_v4 = vld [vmem:[%s2297_s4 + $0x28] sm:$0xff] }
  0xb3   : > { %v1468_v16 = vsel %vm437_vm3, 1.0, %v1707_v9  ;;  %902 = vmatpush.msra.mxu1 %v879_v61 }
  0xb4   : > { %v415_v5 = vpop.permute.xlu2 %414  ;;  %v485_v18 = vadd.f32 %v1468_v16, %v339_v15  ;;  %1566 = vmatpush.msra.mxu2 %v879_v61  ;;  %1567 = vmatpush.msrb.mxu3 %v879_v61  ;;  %v874_v16 = vld [vmem:[%s2297_s4 + $0x8] sm:$0xff] }
  0xb5   : > { %1514 = vmatmul.msk.f32.gmra.mxu0 %vm759_vm4, %v739_v2  ;;  %vm441_vm10 = vcmp.eq.s32.totalorder %v1836_v0, %v415_v5  ;;  %903 = vmatpush.msra.mxu1 %v878_v4 }
  0xb6   : > { %v1472_v39 = vsel %vm441_vm10, 1.0, %v1707_v9  ;;  %1568 = vmatpush.msra.mxu2 %v878_v4  ;;  %1569 = vmatpush.msrb.mxu3 %v878_v4 }
  0xb7   : > { %v489_v44 = vadd.f32 %v1472_v39, %v343_v38  ;;  %904 = vmatpush.msra.mxu1 %v877_v6  ;;  %v346_v39 = vld [vmem:[%s1843_s23 + $0x68] sm:$0xff] }
  0xb8   : > { %v528_v10 = vpop.permute.xlu1 %527  ;;  %1570 = vmatpush.msra.mxu2 %v877_v6  ;;  %1571 = vmatpush.msrb.mxu3 %v877_v6 }
  0xb9   : > { %vm564_vm2 = vcmp.eq.s32.totalorder %v1836_v0, %v528_v10  ;;  %v418_v37 = vpop.permute.xlu0 %417 }
  0xba   : > { %v1483_v13 = vsel %vm564_vm2, 1.0, %v1707_v9  ;;  %vm442_vm12 = vcmp.eq.s32.totalorder %v1836_v0, %v418_v37 }
  0xbb   : > { %v612_v14 = vadd.f32 %v1483_v13, %v484_v11  ;;  %v1473_v42 = vsel %vm442_vm12, 1.0, %v1707_v9  ;;  %v876_v11 = vld [vmem:[%s2297_s4 + $0x18] sm:$0xff] }
  0xbc   : > { %v490_v48 = vadd.f32 %v1473_v42, %v344_v3  ;;  %905 = vmatpush.msra.mxu1 %v876_v11  ;;  %1572 = vmatpush.msra.mxu2 %v876_v11 }
  0xbd   : > { %v740_v17 = vadd.f32 %v1499_v12, %v612_v14  ;;  %v662_v19 = vpop.permute.xlu2 %661  ;;  %v875_v14 = vld [vmem:[%s2297_s4 + $0x10] sm:$0xff]  ;;  %1573 = vmatpush.msrb.mxu3 %v876_v11 }
  0xbe   : > { %vm694_vm9 = vcmp.eq.s32.totalorder %v1836_v0, %v662_v19  ;;  %906 = vmatpush.msra.mxu1 %v875_v14  ;;  %1574 = vmatpush.msra.mxu2 %v875_v14 }
  0xbf   : > { %1515 = vmatmul.msk.f32.gmra.mxu0 %vm759_vm4, %v740_v17  ;;  %v1501_v31 = vsel %vm694_vm9, 1.0, %v1707_v9  ;;  %1575 = vmatpush.msrb.mxu3 %v875_v14 }
  0xc0   : > { %v531_v20 = vpop.permute.xlu1 %530  ;;  %907 = vmatpush.msra.mxu1 %v874_v16  ;;  %1576 = vmatpush.msra.mxu2 %v874_v16 }
  0xc1   : > { %vm565_vm6 = vcmp.eq.s32.totalorder %v1836_v0, %v531_v20  ;;  %v412_v2 = vpop.permute.xlu0 %411  ;;  %1577 = vmatpush.msrb.mxu3 %v874_v16 }
  0xc2   : > { %v1484_v21 = vsel %vm565_vm6, 1.0, %v1707_v9  ;;  %vm440_vm5 = vcmp.eq.s32.totalorder %v1836_v0, %v412_v2 }
  0xc3   : > { %v613_v22 = vadd.f32 %v1484_v21, %v485_v18  ;;  %v873_v18 = vld [vmem:[%s2297_s4] sm:$0xff] }
  0xc4   : > { %908 = vmatpush.msra.mxu1 %v873_v18  ;;  %1578 = vmatpush.msra.mxu2 %v873_v18  ;;  %v345_v21 = vld [vmem:[%s1843_s23 + $0x60] sm:$0xff] }
  0xc5   : > { %v741_v24 = vadd.f32 %v1500_v23, %v613_v22  ;;  %1579 = vmatpush.msrb.mxu3 %v873_v18 }
  0xc6   : > { %v1924_v27 = vpop.permute.xlu2 %408 }
  0xc7   : > { %1516 = vmatmul.msk.f32.gmra.mxu0 %vm759_vm4, %v741_v24  ;;  %vm439_vm0 = vcmp.eq.s32.totalorder %v1836_v0, %v1924_v27  ;;  %v342_v24 = vld [vmem:[%s1843_s23 + $0x48] sm:$0xff] }
  0xc8   : > { %v1470_v63 = vsel %vm439_vm0, 1.0, %v1707_v9 }
  0xc9   : > { %v406_v25 = vpop.permute.xlu1 %405  ;;  %v487_v7 = vadd.f32 %v1470_v63, %v341_v62 }
  0xca   : > { %vm438_vm8 = vcmp.eq.s32.totalorder %v1836_v0, %v406_v25  ;;  %v549_v17 = vpop.permute.xlu0 %548  ;;  %v1471_v25 = vsel %vm440_vm5, 1.0, %v1707_v9 }
  0xcb   : > { %v1469_v29 = vsel %vm438_vm8, 1.0, %v1707_v9  ;;  %vm571_vm3 = vcmp.eq.s32.totalorder %v1836_v0, %v549_v17 }
  0xcc   : > { %v486_v30 = vadd.f32 %v1469_v29, %v340_v26  ;;  %v1490_v23 = vsel %vm571_vm3, 1.0, %v1707_v9  ;;  %v488_v29 = vadd.f32 %v1471_v25, %v342_v24 }
  0xce   : > { %v614_v32 = vadd.f32 %v1485_v28, %v486_v30 }
  0xcf   : > { %v546_v36 = vpop.permute.xlu2 %545 }
  0xd0   : > { %v742_v33 = vadd.f32 %v1501_v31, %v614_v32  ;;  %vm570_vm13 = vcmp.eq.s32.totalorder %v1836_v0, %v546_v36 }
  0xd1   : > { %v1489_v50 = vsel %vm570_vm13, 1.0, %v1707_v9 }
  0xd2   : > { %v543_v34 = vpop.permute.xlu1 %542  ;;  %1517 = vmatmul.msk.f32.gmra.mxu0 %vm759_vm4, %v742_v33  ;;  %v618_v55 = vadd.f32 %v1489_v50, %v490_v48 }
  0xd3   : > { %vm569_vm11 = vcmp.eq.s32.totalorder %v1836_v0, %v543_v34  ;;  %v680_v37 = vpop.permute.xlu0 %679 }
  0xd4   : > { %v1488_v41 = vsel %vm569_vm11, 1.0, %v1707_v9  ;;  %vm700_vm12 = vcmp.eq.s32.totalorder %v1836_v0, %v680_v37 }
  0xd5   : > { %v617_v47 = vadd.f32 %v1488_v41, %v489_v44  ;;  %v1507_v43 = vsel %vm700_vm12, 1.0, %v1707_v9 }
  0xd8   : > { %v674_v51 = vpop.permute.xlu2 %673 }
  0xd9   : > { %vm698_vm15 = vcmp.eq.s32.totalorder %v1836_v0, %v674_v51 }
  0xda   : > { %v1505_v56 = vsel %vm698_vm15, 1.0, %v1707_v9 }
  0xdb   : > { %v671_v45 = vpop.permute.xlu1 %670  ;;  %v746_v59 = vadd.f32 %v1505_v56, %v618_v55 }
  0xdc   : > { %vm697_vm14 = vcmp.eq.s32.totalorder %v1836_v0, %v671_v45  ;;  %v558_v54 = vpop.permute.xlu0 %557 }
  0xdd   : > { %v1504_v49 = vsel %vm697_vm14, 1.0, %v1707_v9 }
  0xde   : > { %v745_v53 = vadd.f32 %v1504_v49, %v617_v47  ;;  %v347_v49 = vld [vmem:[%s1843_s23 + $0x70] sm:$0xff] }
  0xe0   : > { %1520 = vmatmul.msk.f32.vlgmr.msra.gmra.mxu3 %vm759_vm4, %v745_v53 }
  0xe1   : > { %v540_v8 = vpop.permute.xlu2 %539 }
  0xe2   : > { %vm568_vm8 = vcmp.eq.s32.totalorder %v1836_v0, %v540_v8 }
  0xe3   : > { %v1487_v30 = vsel %vm568_vm8, 1.0, %v1707_v9 }
  0xe4   : > { %v537_v58 = vpop.permute.xlu1 %536  ;;  %v616_v33 = vadd.f32 %v1487_v30, %v488_v29 }
  0xe5   : > { %vm567_vm1 = vcmp.eq.s32.totalorder %v1836_v0, %v537_v58 }
  0xe6   : > { %v1486_v5 = vsel %vm567_vm1, 1.0, %v1707_v9  ;;  %vm574_vm1 = vcmp.eq.s32.totalorder %v1836_v0, %v558_v54 }
  0xe7   : > { %v615_v12 = vadd.f32 %v1486_v5, %v487_v7  ;;  %v1493_v4 = vsel %vm574_vm1, 1.0, %v1707_v9 }
  0xe8   : > { %1521 = vmatmul.msk.f32.gmra.mxu3 %vm759_vm4, %v746_v59 }
  0xea   : > { %v677_v19 = vpop.permute.xlu2 %676 }
  0xeb   : > { %vm699_vm7 = vcmp.eq.s32.totalorder %v1836_v0, %v677_v19 }
  0xec   : > { %v1506_v27 = vsel %vm699_vm7, 1.0, %v1707_v9 }
  0xed   : > { %v665_v10 = vpop.permute.xlu1 %664 }
  0xee   : > { %vm695_vm2 = vcmp.eq.s32.totalorder %v1836_v0, %v665_v10 }
  0xef   : > { %v1502_v13 = vsel %vm695_vm2, 1.0, %v1707_v9 }
  0xf0   : > { %v743_v15 = vadd.f32 %v1502_v13, %v615_v12 }
  0xf2   : > { %1518 = vmatmul.msk.f32.gmra.mxu0 %vm759_vm4, %v743_v15 }
  0xf3   : > { %v552_v35 = vpop.permute.xlu2 %551 }
  0xf4   : > { %vm572_vm10 = vcmp.eq.s32.totalorder %v1836_v0, %v552_v35 }
  0xf5   : > { %v1491_v40 = vsel %vm572_vm10, 1.0, %v1707_v9 }
  0xf6   : > { %v421_v20 = vpop.permute.xlu1 %420 }
  0xf7   : > { %vm443_vm6 = vcmp.eq.s32.totalorder %v1836_v0, %v421_v20 }
  0xf8   : > { %v1474_v22 = vsel %vm443_vm6, 1.0, %v1707_v9 }
  0xf9   : > { %v491_v26 = vadd.f32 %v1474_v22, %v345_v21 }
  0xfb   : > { %v619_v28 = vadd.f32 %v1490_v23, %v491_v26  ;;  %v555_v42 = vpop.permute.xlu2 %554  ;;  %v2097_v26 = vld [vmem:[%s2298_s5] ss:$0 sm:$0xff] }
  0xfc   : > { %vm573_vm14 = vcmp.eq.s32.totalorder %v1836_v0, %v555_v42 }
  0xfd   : > { %v747_v31 = vadd.f32 %v1506_v27, %v619_v28  ;;  %v1492_v55 = vsel %vm573_vm14, 1.0, %v1707_v9 }
  0xff   : > { %v668_v32 = vpop.permute.xlu1 %667  ;;  %1522 = vmatmul.msk.f32.gmra.mxu3 %vm759_vm4, %v747_v31 }
 0x100   : > { %vm696_vm9 = vcmp.eq.s32.totalorder %v1836_v0, %v668_v32 }
 0x101   : > { %v1503_v34 = vsel %vm696_vm9, 1.0, %v1707_v9 }
 0x102   : > { %v744_v36 = vadd.f32 %v1503_v34, %v616_v33 }
 0x104   : > { %1519 = vmatmul.msk.f32.gmra.mxu0 %vm759_vm4, %v744_v36  ;;  %v430_v52 = vpop.permute.xlu2 %429 }
 0x105   : > { %vm446_vm15 = vcmp.eq.s32.totalorder %v1836_v0, %v430_v52 }
 0x106   : > { %v1477_v1 = vsel %vm446_vm15, 1.0, %v1707_v9 }
 0x107   : > { %v494_v63 = vadd.f32 %v1477_v1, %v348_v57 }
 0x108   : > { %v424_v38 = vpop.permute.xlu1 %423 }
 0x109   : > { %vm444_vm11 = vcmp.eq.s32.totalorder %v1836_v0, %v424_v38  ;;  %v622_v2 = vadd.f32 %v1493_v4, %v494_v63 }
 0x10a   : > { %v1475_v41 = vsel %vm444_vm11, 1.0, %v1707_v9 }
 0x10b   : > { %v492_v3 = vadd.f32 %v1475_v41, %v346_v39 }
 0x10d   : > { %v620_v44 = vadd.f32 %v1491_v40, %v492_v3 }
 0x10f   : > { %v748_v45 = vadd.f32 %v1507_v43, %v620_v44 }
 0x110   : > { %v427_v47 = vpop.permute.xlu1 %426 }
 0x111   : > { %vm445_vm13 = vcmp.eq.s32.totalorder %v1836_v0, %v427_v47  ;;  %1523 = vmatmul.msk.f32.gmra.mxu3 %vm759_vm4, %v748_v45 }
 0x112   : > { %v825_v48 = vpop.f32.mrf.mxu0  ;;  %v1476_v50 = vsel %vm445_vm13, 1.0, %v1707_v9 }
 0x113   : > { %v2038_v51 = vadd.f32 %v2031_v46, %v825_v48  ;;  %v493_v53 = vadd.f32 %v1476_v50, %v347_v49 }
 0x115   : > { %909 = vmatmul.f32.vlgmr.msra.gmra.mxu1 %v2038_v51  ;;  %v621_v58 = vadd.f32 %v1492_v55, %v493_v53 }
 0x119   : > { %v683_v56 = vpop.permute.xlu1 %682 }
 0x11a   : > { %vm701_vm0 = vcmp.eq.s32.totalorder %v1836_v0, %v683_v56  ;;  %v828_v59 = vpop.f32.mrf.mxu0 }
 0x11b   : > { %v1508_v60 = vsel %vm701_vm0, 1.0, %v1707_v9  ;;  %v2050_v61 = vadd.f32 %v2031_v46, %v828_v59 }
 0x11c   : > { %v749_v62 = vadd.f32 %v1508_v60, %v621_v58 }
 0x11d   : > { %912 = vmatmul.f32.gmra.mxu1 %v2050_v61 }
 0x11e   : > { %1524 = vmatmul.msk.f32.gmra.mxu3 %vm759_vm4, %v749_v62 }
 0x121   : > { %v686_v5 = vpop.permute.xlu1 %685 }
 0x122   : > { %vm702_vm2 = vcmp.eq.s32.totalorder %v1836_v0, %v686_v5  ;;  %v831_v6 = vpop.f32.mrf.mxu0 }
 0x123   : > { %v1509_v7 = vsel %vm702_vm2, 1.0, %v1707_v9  ;;  %v2058_v8 = vadd.f32 %v2031_v46, %v831_v6 }
 0x124   : > { %v750_v10 = vadd.f32 %v1509_v7, %v622_v2  ;;  %v2135_v7 = vld [vmem:[%s2299_s6] ss:$0 sm:$0xff] }
 0x125   : > { %915 = vmatmul.f32.gmra.mxu1 %v2058_v8 }
 0x126   : > { %1525 = vmatmul.msk.f32.gmra.mxu3 %vm759_vm4, %v750_v10 }
 0x12a   : > { %v834_v11 = vpop.f32.mrf.mxu0 }
 0x12b   : > { %v2063_v12 = vadd.f32 %v2031_v46, %v834_v11 }
 0x12d   : > { %918 = vmatmul.f32.gmra.mxu1 %v2063_v12 }
 0x132   : > { %v837_v13 = vpop.f32.mrf.mxu0 }
 0x133   : > { %v2067_v0 = vadd.f32 %v2031_v46, %v837_v13 }
 0x135   : > { %921 = vmatmul.f32.gmra.mxu1 %v2067_v0 }
 0x13c   : > { %v840_v9 = vpop.f32.mrf.mxu0 }
 0x13d   : > { %v2071_v14 = vadd.f32 %v2031_v46, %v840_v9 }
 0x13f   : > { %924 = vmatmul.f32.gmra.mxu1 %v2071_v14 }
 0x144   : > { %v843_v15 = vpop.f32.mrf.mxu0 }
 0x145   : > { %v2075_v16 = vadd.f32 %v2031_v46, %v843_v15 }
 0x147   : > { %927 = vmatmul.f32.gmra.mxu1 %v2075_v16 }
 0x14f   : > { %v846_v17 = vpop.f32.mrf.mxu0 }
 0x150   : > { %v2079_v18 = vadd.f32 %v2031_v46, %v846_v17 }
 0x152   : > { %930 = vmatmul.f32.vlgmr.msra.gmra.mxu2 %v2079_v18 }
 0x163   : > { %v855_v21 = vpop.f32.mrf.mxu3 }
 0x164   : > { %v2091_v25 = vadd.f32 %v2031_v46, %v855_v21 }
 0x16b   : > { %v858_v24 = vpop.f32.mrf.mxu3 }
 0x16c   : > { %v2100_v28 = vadd.f32 %v2031_v46, %v858_v24 }
 0x16f   : > { %v849_v19 = vpop.f32.mrf.mxu0 }
 0x170   : > { %v2083_v20 = vadd.f32 %v2031_v46, %v849_v19 }
 0x172   : > { %933 = vmatmul.f32.gmra.mxu2 %v2083_v20 }
 0x181   : > { %v852_v22 = vpop.f32.mrf.mxu0 }
 0x182   : > { %v2087_v23 = vadd.f32 %v2031_v46, %v852_v22  ;;  %v861_v27 = vpop.f32.mrf.mxu3 }
 0x183   : > { %v2105_v33 = vadd.f32 %v2031_v46, %v861_v27 }
 0x184   : > { %936 = vmatmul.f32.gmra.mxu2 %v2087_v23 }
 0x18c   : > { %939 = vmatmul.f32.gmra.mxu2 %v2091_v25 }
 0x192   : > { %v910_v29 = vpop.f32.mrf.mxu1 }
 0x193   : > { %v911_v30 = vadd.f32 %v2097_v26, %v910_v29 }
 0x194   : > { %942 = vmatmul.f32.gmra.mxu2 %v2100_v28  ;;  %v864_v32 = vpop.f32.mrf.mxu3 }
 0x195   : > { %v1526_v31 = vmul.f32 -1.442695, %v911_v30  ;;  %v2113_v40 = vadd.f32 %v2031_v46, %v864_v32 }
 0x197   : > { %1632 = vpow2.f32 %v1526_v31 }
 0x19a   : > { %v913_v34 = vpop.f32.mrf.mxu1 }
 0x19b   : > { %v2108_v35 = vadd.f32 %v2097_v26, %v913_v34 }
 0x19c   : > { %945 = vmatmul.f32.gmra.mxu2 %v2105_v33 }
 0x19d   : > { %v1633_v36 = vpop.eup %1632  ;;  %v1527_v37 = vmul.f32 -1.442695, %v2108_v35 }
 0x19e   : > { %v1006_v38 = vadd.f32 1.0, %v1633_v36 }
 0x19f   : > { %1634 = vpow2.f32 %v1527_v37 }
 0x1a0   : > { %1636 = vrcp.f32 %v1006_v38  ;;  %v1033_v52 = vand.u32 2147483648, %v1006_v38  ;;  %v1031_v56 = vand.u32 2147483647, %v1006_v38  ;;  %vm1027_vm3 = vweird.f32 %v1006_v38 }
 0x1a1   : > { %v867_v39 = vpop.f32.mrf.mxu3 }
 0x1a2   : > { %v2116_v41 = vadd.f32 %v2031_v46, %v867_v39  ;;  %v916_v3 = vpop.f32.mrf.mxu1  ;;  %v1034_v62 = vor.u32 1.1754944e-38, %v1033_v52  ;;  %vm1032_vm6 = vcmp.eq.f32.partialorder %v1031_v56, 8.507059e+37 }
 0x1a3   : > { %v2119_v42 = vadd.f32 %v2097_v26, %v916_v3 }
 0x1a4   : > { %948 = vmatmul.f32.gmra.mxu2 %v2113_v40  ;;  %951 = vmatmul.f32.vlgmr.msrb.gmra.mxu3 %v2116_v41 }
 0x1a5   : > { %v1635_v43 = vpop.eup %1634  ;;  %v1528_v44 = vmul.f32 -1.442695, %v2119_v42 }
 0x1a6   : > { %v1637_v45 = vpop.eup %1636  ;;  %v1007_v47 = vadd.f32 1.0, %v1635_v43 }
 0x1a7   : > { %v1023_v48 = vmul.f32 %v1637_v45, %v1006_v38  ;;  %1638 = vpow2.f32 %v1528_v44  ;;  %vm1028_vm4 = vweird.f32 %v1637_v45 }
 0x1a8   : > { %1640 = vrcp.f32 %v1007_v47  ;;  %vm1029_vm5 = vmor %vm1027_vm3, %vm1028_vm4  ;;  %v1046_v10 = vand.u32 2147483647, %v1007_v47  ;;  %v1048_v11 = vand.u32 2147483648, %v1007_v47  ;;  %vm1042_vm8 = vweird.f32 %v1007_v47 }
 0x1a9   : > { %v1024_v49 = vsub.f32 1.0, %v1023_v48  ;;  %v870_v50 = vpop.f32.mrf.mxu3 }
 0x1aa   : > { %v2125_v53 = vadd.f32 %v2031_v46, %v870_v50  ;;  %v919_v54 = vpop.f32.mrf.mxu1  ;;  %v1049_v29 = vor.u32 1.1754944e-38, %v1048_v11  ;;  %vm1047_vm10 = vcmp.eq.f32.partialorder %v1046_v10, 8.507059e+37 }
 0x1ab   : > { %v1025_v55 = vmul.f32 %v1637_v45, %v1024_v49  ;;  %v2128_v57 = vadd.f32 %v2097_v26, %v919_v54 }
 0x1ac   : > { %954 = vmatmul.f32.gmra.mxu3 %v2125_v53 }
 0x1ad   : > { %v1639_v1 = vpop.eup %1638  ;;  %v1026_v58 = vadd.f32 %v1637_v45, %v1025_v55  ;;  %v1529_v59 = vmul.f32 -1.442695, %v2128_v57 }
 0x1ae   : > { %v1641_v60 = vpop.eup %1640  ;;  %v1008_v63 = vadd.f32 1.0, %v1639_v1 }
 0x1af   : > { %v1030_v46 = vsel %vm1029_vm5, %v1637_v45, %v1026_v58  ;;  %v1038_v4 = vmul.f32 %v1641_v60, %v1007_v47  ;;  %1642 = vpow2.f32 %v1529_v59  ;;  %vm1043_vm7 = vweird.f32 %v1641_v60 }
 0x1b0   : > { %v1035_v2 = vsel %vm1032_vm6, %v1034_v62, %v1030_v46  ;;  %1644 = vrcp.f32 %v1008_v63  ;;  %vm1044_vm9 = vmor %vm1042_vm8, %vm1043_vm7  ;;  %v1063_v37 = vand.u32 2147483648, %v1008_v63  ;;  %v1061_v39 = vand.u32 2147483647, %v1008_v63 }
 0x1b1   : > { %v1262_v5 = vmul.f32 %v1035_v2, %v911_v30  ;;  %v1039_v6 = vsub.f32 1.0, %v1038_v4  ;;  %vm1057_vm12 = vweird.f32 %v1008_v63 }
 0x1b2   : > { %v922_v13 = vpop.f32.mrf.mxu1  ;;  %v1064_v50 = vor.u32 1.1754944e-38, %v1063_v37  ;;  %vm1062_vm14 = vcmp.eq.f32.partialorder %v1061_v39, 8.507059e+37 }
 0x1b3   : > { %v1040_v9 = vmul.f32 %v1641_v60, %v1039_v6  ;;  %v2138_v15 = vadd.f32 %v2097_v26, %v922_v13  ;;  %v1278_v17 = vadd.f32 %v1262_v5, %v2038_v51 }
 0x1b5   : > { %v1643_v19 = vpop.eup %1642  ;;  %v1041_v21 = vadd.f32 %v1641_v60, %v1040_v9  ;;  %v1530_v22 = vmul.f32 -1.442695, %v2138_v15  ;;  %v1298_v24 = vmul.f32 %v2135_v7, %v1278_v17 }
 0x1b6   : > { %v1645_v27 = vpop.eup %1644  ;;  %v1009_v30 = vadd.f32 1.0, %v1643_v19 }
 0x1b7   : > { %v1045_v31 = vsel %vm1044_vm9, %v1641_v60, %v1041_v21  ;;  %v1053_v32 = vmul.f32 %v1645_v27, %v1008_v63  ;;  %1646 = vpow2.f32 %v1530_v22  ;;  %1314 = vadd.xlane.f32.xlu2 %v1298_v24  ;;  %vm1058_vm11 = vweird.f32 %v1645_v27 }
 0x1b8   : > { %v1050_v34 = vsel %vm1047_vm10, %v1049_v29, %v1045_v31  ;;  %1648 = vrcp.f32 %v1009_v30  ;;  %vm1059_vm13 = vmor %vm1057_vm12, %vm1058_vm11  ;;  %v1078_v58 = vand.u32 2147483648, %v1009_v30  ;;  %v1076_v60 = vand.u32 2147483647, %v1009_v30 }
 0x1b9   : > { %v1263_v51 = vmul.f32 %v1050_v34, %v2108_v35  ;;  %v1054_v36 = vsub.f32 1.0, %v1053_v32  ;;  %vm1072_vm0 = vweird.f32 %v1009_v30 }
 0x1ba   : > { %v1079_v6 = vor.u32 1.1754944e-38, %v1078_v58  ;;  %vm1077_vm2 = vcmp.eq.f32.partialorder %v1076_v60, 8.507059e+37 }
 0x1bb   : > { %v1055_v38 = vmul.f32 %v1645_v27, %v1054_v36  ;;  %v1279_v3 = vadd.f32 %v1263_v51, %v2050_v61 }
 0x1bc   : > { %v925_v43 = vpop.f32.mrf.mxu1 }
 0x1bd   : > { %v1647_v44 = vpop.eup %1646  ;;  %v1056_v45 = vadd.f32 %v1645_v27, %v1055_v38  ;;  %v2146_v47 = vadd.f32 %v2097_v26, %v925_v43  ;;  %v1299_v48 = vmul.f32 %v2135_v7, %v1279_v3 }
 0x1be   : > { %v1649_v49 = vpop.eup %1648  ;;  %v1010_v35 = vadd.f32 1.0, %v1647_v44 }
 0x1bf   : > { %v1060_v52 = vsel %vm1059_vm13, %v1645_v27, %v1056_v45  ;;  %v1068_v54 = vmul.f32 %v1649_v49, %v1009_v30  ;;  %v1531_v55 = vmul.f32 -1.442695, %v2146_v47  ;;  %1316 = vadd.xlane.f32.xlu1 %v1299_v48  ;;  %vm1073_vm15 = vweird.f32 %v1649_v49 }
 0x1c0   : > { %v1065_v61 = vsel %vm1062_vm14, %v1064_v50, %v1060_v52  ;;  %1650 = vrcp.f32 %v1010_v35  ;;  %vm1074_vm1 = vmor %vm1072_vm0, %vm1073_vm15  ;;  %v1093_v21 = vand.u32 2147483648, %v1010_v35  ;;  %v1091_v24 = vand.u32 2147483647, %v1010_v35 }
 0x1c1   : > { %v1264_v56 = vmul.f32 %v1065_v61, %v2119_v42  ;;  %v1069_v1 = vsub.f32 1.0, %v1068_v54  ;;  %1652 = vpow2.f32 %v1531_v55  ;;  %vm1087_vm3 = vweird.f32 %v1010_v35 }
 0x1c2   : > { %v1094_v31 = vor.u32 1.1754944e-38, %v1093_v21  ;;  %vm1092_vm6 = vcmp.eq.f32.partialorder %v1091_v24, 8.507059e+37 }
 0x1c3   : > { %v1070_v59 = vmul.f32 %v1649_v49, %v1069_v1  ;;  %v1280_v62 = vadd.f32 %v1264_v56, %v2058_v8 }
 0x1c4   : > { %v928_v63 = vpop.f32.mrf.mxu1 }
 0x1c5   : > { %v1071_v46 = vadd.f32 %v1649_v49, %v1070_v59  ;;  %v2153_v4 = vadd.f32 %v2097_v26, %v928_v63  ;;  %v1300_v2 = vmul.f32 %v2135_v7, %v1280_v62 }
 0x1c6   : > { %v1651_v5 = vpop.eup %1650 }
 0x1c7   : > { %v1653_v42 = vpop.eup %1652  ;;  %v1075_v10 = vsel %vm1074_vm1, %v1649_v49, %v1071_v46  ;;  %v1083_v11 = vmul.f32 %v1651_v5, %v1010_v35  ;;  %v1532_v13 = vmul.f32 -1.442695, %v2153_v4  ;;  %1318 = vadd.xlane.f32.xlu0 %v1300_v2  ;;  %vm1088_vm4 = vweird.f32 %v1651_v5 }
 0x1c8   : > { %v1080_v9 = vsel %vm1077_vm2, %v1079_v6, %v1075_v10  ;;  %v1011_v8 = vadd.f32 1.0, %v1653_v42  ;;  %vm1089_vm5 = vmor %vm1087_vm3, %vm1088_vm4 }
 0x1c9   : > { %v1265_v17 = vmul.f32 %v1080_v9, %v2128_v57  ;;  %v1084_v19 = vsub.f32 1.0, %v1083_v11  ;;  %1654 = vpow2.f32 %v1532_v13 }
 0x1ca   : > { %1656 = vrcp.f32 %v1011_v8  ;;  %v1108_v3 = vand.u32 2147483648, %v1011_v8  ;;  %v1106_v44 = vand.u32 2147483647, %v1011_v8  ;;  %vm1102_vm8 = vweird.f32 %v1011_v8 }
 0x1cb   : > { %v1085_v22 = vmul.f32 %v1651_v5, %v1084_v19  ;;  %v1281_v27 = vadd.f32 %v1265_v17, %v2063_v12 }
 0x1cc   : > { %vm1107_vm10 = vcmp.eq.f32.partialorder %v1106_v44, 8.507059e+37 }
 0x1cd   : > { %v1086_v29 = vadd.f32 %v1651_v5, %v1085_v22  ;;  %v1301_v30 = vmul.f32 %v2135_v7, %v1281_v27 }
 0x1cf   : > { %v1655_v32 = vpop.eup %1654  ;;  %v1090_v34 = vsel %vm1089_vm5, %v1651_v5, %v1086_v29  ;;  %1320 = vadd.xlane.f32.xlu2 %v1301_v30 }
 0x1d0   : > { %v1657_v57 = vpop.eup %1656  ;;  %v1095_v51 = vsel %vm1092_vm6, %v1094_v31, %v1090_v34  ;;  %v1012_v36 = vadd.f32 1.0, %v1655_v32 }
 0x1d1   : > { %v1266_v37 = vmul.f32 %v1095_v51, %v2138_v15  ;;  %v1098_v38 = vmul.f32 %v1657_v57, %v1011_v8  ;;  %vm1103_vm7 = vweird.f32 %v1657_v57  ;;  %v1109_v15 = vor.u32 1.1754944e-38, %v1108_v3 }
 0x1d2   : > { %1658 = vrcp.f32 %v1012_v36  ;;  %vm1104_vm9 = vmor %vm1102_vm8, %vm1103_vm7  ;;  %v1123_v1 = vand.u32 2147483648, %v1012_v36  ;;  %v1121_v59 = vand.u32 2147483647, %v1012_v36  ;;  %vm1117_vm12 = vweird.f32 %v1012_v36 }
 0x1d3   : > { %v1099_v39 = vsub.f32 1.0, %v1098_v38  ;;  %v1282_v12 = vadd.f32 %v1266_v37, %v2067_v0 }
 0x1d4   : > { %v1124_v2 = vor.u32 1.1754944e-38, %v1123_v1  ;;  %vm1122_vm14 = vcmp.eq.f32.partialorder %v1121_v59, 8.507059e+37 }
 0x1d5   : > { %v1100_v43 = vmul.f32 %v1657_v57, %v1099_v39  ;;  %v931_v45 = vpop.f32.mrf.mxu2  ;;  %v1302_v48 = vmul.f32 %v2135_v7, %v1282_v12 }
 0x1d6   : > { %v932_v49 = vadd.f32 %v2097_v26, %v931_v45 }
 0x1d7   : > { %v1101_v50 = vadd.f32 %v1657_v57, %v1100_v43  ;;  %1322 = vadd.xlane.f32.xlu2 %v1302_v48 }
 0x1d8   : > { %v1659_v35 = vpop.eup %1658  ;;  %v1533_v52 = vmul.f32 -1.442695, %v932_v49 }
 0x1d9   : > { %v1105_v54 = vsel %vm1104_vm9, %v1657_v57, %v1101_v50  ;;  %v1113_v55 = vmul.f32 %v1659_v35, %v1012_v36  ;;  %vm1118_vm11 = vweird.f32 %v1659_v35 }
 0x1da   : > { %v1110_v0 = vsel %vm1107_vm10, %v1109_v15, %v1105_v54  ;;  %1660 = vpow2.f32 %v1533_v52  ;;  %vm1119_vm13 = vmor %vm1117_vm12, %vm1118_vm11  ;;  %vm1366_vm12 = vcmask 7168  }
 0x1db   : > { %v1267_v61 = vmul.f32 %v1110_v0, %v2146_v47  ;;  %v1114_v56 = vsub.f32 1.0, %v1113_v55 }
 0x1dd   : > { %v1115_v58 = vmul.f32 %v1659_v35, %v1114_v56  ;;  %v1283_v60 = vadd.f32 %v1267_v61, %v2071_v14 }
 0x1df   : > { %v1116_v62 = vadd.f32 %v1659_v35, %v1115_v58  ;;  %v1303_v63 = vmul.f32 %v2135_v7, %v1283_v60 }
 0x1e0   : > { %v1661_v46 = vpop.eup %1660 }
 0x1e1   : > { %v1120_v5 = vsel %vm1119_vm13, %v1659_v35, %v1116_v62  ;;  %v1013_v6 = vadd.f32 1.0, %v1661_v46  ;;  %1324 = vadd.xlane.f32.xlu1 %v1303_v63 }
 0x1e2   : > { %v1125_v42 = vsel %vm1122_vm14, %v1124_v2, %v1120_v5 }
 0x1e3   : > { %v1268_v47 = vmul.f32 %v1125_v42, %v2153_v4  ;;  %1662 = vrcp.f32 %v1013_v6  ;;  %v1138_v8 = vand.u32 2147483648, %v1013_v6  ;;  %v1136_v19 = vand.u32 2147483647, %v1013_v6 }
 0x1e4   : > { %vm1132_vm0 = vweird.f32 %v1013_v6 }
 0x1e5   : > { %v1284_v10 = vadd.f32 %v1268_v47, %v2075_v16  ;;  %v1139_v22 = vor.u32 1.1754944e-38, %v1138_v8  ;;  %vm1137_vm2 = vcmp.eq.f32.partialorder %v1136_v19, 8.507059e+37 }
 0x1e7   : > { %v1304_v11 = vmul.f32 %v2135_v7, %v1284_v10 }
 0x1e9   : > { %v1663_v14 = vpop.eup %1662  ;;  %1326 = vadd.xlane.f32.xlu2 %v1304_v11 }
 0x1ea   : > { %v1128_v13 = vmul.f32 %v1663_v14, %v1013_v6  ;;  %vm1133_vm15 = vweird.f32 %v1663_v14 }
 0x1eb   : > { %vm1134_vm1 = vmor %vm1132_vm0, %vm1133_vm15 }
 0x1ec   : > { %v1129_v9 = vsub.f32 1.0, %v1128_v13 }
 0x1ee   : > { %v1130_v17 = vmul.f32 %v1663_v14, %v1129_v9 }
 0x1f0   : > { %v1131_v21 = vadd.f32 %v1663_v14, %v1130_v17 }
 0x1f2   : > { %v1135_v24 = vsel %vm1134_vm1, %v1663_v14, %v1131_v21 }
 0x1f3   : > { %v1140_v4 = vsel %vm1137_vm2, %v1139_v22, %v1135_v24 }
 0x1f4   : > { %v1269_v27 = vmul.f32 %v1140_v4, %v932_v49 }
 0x1f5   : > { %v934_v29 = vpop.f32.mrf.mxu2 }
 0x1f6   : > { %v935_v16 = vadd.f32 %v2097_v26, %v934_v29  ;;  %v1285_v30 = vadd.f32 %v1269_v27, %v2079_v18 }
 0x1f8   : > { %v1534_v31 = vmul.f32 -1.442695, %v935_v16  ;;  %v1305_v32 = vmul.f32 %v2135_v7, %v1285_v30 }
 0x1fa   : > { %1664 = vpow2.f32 %v1534_v31  ;;  %1328 = vadd.xlane.f32.xlu0 %v1305_v32 }
 0x200   : > { %v1665_v34 = vpop.eup %1664 }
 0x201   : > { %v1014_v57 = vadd.f32 1.0, %v1665_v34 }
 0x203   : > { %1666 = vrcp.f32 %v1014_v57  ;;  %v1153_v3 = vand.u32 2147483648, %v1014_v57  ;;  %v1151_v18 = vand.u32 2147483647, %v1014_v57  ;;  %vm1147_vm3 = vweird.f32 %v1014_v57 }
 0x205   : > { %v1154_v49 = vor.u32 1.1754944e-38, %v1153_v3  ;;  %vm1152_vm6 = vcmp.eq.f32.partialorder %v1151_v18, 8.507059e+37 }
 0x207   : > { %v937_v51 = vpop.f32.mrf.mxu2 }
 0x208   : > { %v938_v36 = vadd.f32 %v2097_v26, %v937_v51 }
 0x209   : > { %v1667_v37 = vpop.eup %1666 }
 0x20a   : > { %v1143_v38 = vmul.f32 %v1667_v37, %v1014_v57  ;;  %v1535_v39 = vmul.f32 -1.442695, %v938_v36  ;;  %vm1148_vm4 = vweird.f32 %v1667_v37 }
 0x20b   : > { %vm1149_vm5 = vmor %vm1147_vm3, %vm1148_vm4 }
 0x20c   : > { %v1144_v12 = vsub.f32 1.0, %v1143_v38  ;;  %1668 = vpow2.f32 %v1535_v39 }
 0x20e   : > { %v1145_v43 = vmul.f32 %v1667_v37, %v1144_v12 }
 0x20f   : > { %v940_v44 = vpop.f32.mrf.mxu2 }
 0x210   : > { %v1146_v45 = vadd.f32 %v1667_v37, %v1145_v43  ;;  %v2175_v48 = vadd.f32 %v2097_v26, %v940_v44 }
 0x212   : > { %v1669_v50 = vpop.eup %1668  ;;  %v1150_v35 = vsel %vm1149_vm5, %v1667_v37, %v1146_v45  ;;  %v1536_v15 = vmul.f32 -1.442695, %v2175_v48 }
 0x213   : > { %v1155_v52 = vsel %vm1152_vm6, %v1154_v49, %v1150_v35  ;;  %v1015_v54 = vadd.f32 1.0, %v1669_v50 }
 0x214   : > { %v1270_v55 = vmul.f32 %v1155_v52, %v935_v16  ;;  %1670 = vpow2.f32 %v1536_v15  ;;  %v2191_v16 = vld [vmem:[#allocation2] ss:$0 sm:$0xff] }
 0x215   : > { %1672 = vrcp.f32 %v1015_v54  ;;  %v1168_v2 = vand.u32 2147483648, %v1015_v54  ;;  %vm1162_vm8 = vweird.f32 %v1015_v54 }
 0x216   : > { %v1286_v0 = vadd.f32 %v1270_v55, %v2083_v20  ;;  %v1166_v20 = vand.u32 2147483647, %v1015_v54 }
 0x217   : > { %v943_v61 = vpop.f32.mrf.mxu2  ;;  %v1169_v13 = vor.u32 1.1754944e-38, %v1168_v2 }
 0x218   : > { %v2180_v56 = vadd.f32 %v2097_v26, %v943_v61  ;;  %v1306_v1 = vmul.f32 %v2135_v7, %v1286_v0  ;;  %vm1167_vm10 = vcmp.eq.f32.partialorder %v1166_v20, 8.507059e+37 }
 0x21a   : > { %v1671_v58 = vpop.eup %1670  ;;  %v1537_v59 = vmul.f32 -1.442695, %v2180_v56  ;;  %1330 = vadd.xlane.f32.xlu1 %v1306_v1 }
 0x21b   : > { %v1673_v60 = vpop.eup %1672  ;;  %v1016_v62 = vadd.f32 1.0, %v1671_v58 }
 0x21c   : > { %v1158_v63 = vmul.f32 %v1673_v60, %v1015_v54  ;;  %1674 = vpow2.f32 %v1537_v59  ;;  %vm1163_vm7 = vweird.f32 %v1673_v60 }
 0x21d   : > { %1676 = vrcp.f32 %v1016_v62  ;;  %vm1164_vm9 = vmor %vm1162_vm8, %vm1163_vm7  ;;  %v1181_v24 = vand.u32 2147483647, %v1016_v62  ;;  %v1183_v4 = vand.u32 2147483648, %v1016_v62  ;;  %vm1177_vm13 = vweird.f32 %v1016_v62 }
 0x21e   : > { %v1159_v46 = vsub.f32 1.0, %v1158_v63 }
 0x21f   : > { %v946_v5 = vpop.f32.mrf.mxu2  ;;  %v1184_v12 = vor.u32 1.1754944e-38, %v1183_v4  ;;  %vm1182_vm15 = vcmp.eq.f32.partialorder %v1181_v24, 8.507059e+37 }
 0x220   : > { %v1160_v6 = vmul.f32 %v1673_v60, %v1159_v46  ;;  %v2185_v42 = vadd.f32 %v2097_v26, %v946_v5 }
 0x222   : > { %v1675_v47 = vpop.eup %1674  ;;  %v1161_v10 = vadd.f32 %v1673_v60, %v1160_v6  ;;  %v1538_v11 = vmul.f32 -1.442695, %v2185_v42 }
 0x223   : > { %v1677_v14 = vpop.eup %1676  ;;  %v2188_v9 = vadd.f32 1.0, %v1675_v47 }
 0x224   : > { %v1165_v8 = vsel %vm1164_vm9, %v1673_v60, %v1161_v10  ;;  %v1173_v17 = vmul.f32 %v1677_v14, %v1016_v62  ;;  %1678 = vpow2.f32 %v1538_v11  ;;  %vm1178_vm11 = vweird.f32 %v1677_v14 }
 0x225   : > { %v1170_v19 = vsel %vm1167_vm10, %v1169_v13, %v1165_v8  ;;  %1680 = vrcp.f32 %v2188_v9  ;;  %vm1179_vm14 = vmor %vm1177_vm13, %vm1178_vm11  ;;  %v1196_v35 = vand.u32 2147483647, %v2188_v9  ;;  %v1198_v15 = vand.u32 2147483648, %v2188_v9 }
 0x226   : > { %v1271_v21 = vmul.f32 %v1170_v19, %v938_v36  ;;  %v1174_v22 = vsub.f32 1.0, %v1173_v17  ;;  %vm1192_vm1 = vweird.f32 %v2188_v9 }
 0x227   : > { %v949_v27 = vpop.f32.mrf.mxu2  ;;  %v952_v29 = vpop.f32.mrf.mxu3  ;;  %v1199_v62 = vor.u32 1.1754944e-38, %v1198_v15  ;;  %vm1197_vm4 = vcmp.eq.f32.partialorder %v1196_v35, 8.507059e+37 }
 0x228   : > { %v1175_v30 = vmul.f32 %v1677_v14, %v1174_v22  ;;  %v2194_v31 = vadd.f32 %v2097_v26, %v949_v27  ;;  %v2197_v32 = vadd.f32 %v2097_v26, %v952_v29  ;;  %v1287_v34 = vadd.f32 %v1271_v21, %v2087_v23 }
 0x22a   : > { %v1679_v57 = vpop.eup %1678  ;;  %v1176_v51 = vadd.f32 %v1677_v14, %v1175_v30  ;;  %v1539_v36 = vmul.f32 -1.442695, %v2194_v31  ;;  %v1540_v37 = vmul.f32 -1.442695, %v2197_v32  ;;  %v1315_v38 = vpop.xlane.xlu2 %1314  ;;  %v1307_v43 = vmul.f32 %v2135_v7, %v1287_v34 }
 0x22b   : > { %v1681_v39 = vpop.eup %1680  ;;  %v1018_v3 = vadd.f32 1.0, %v1679_v57  ;;  %v1350_v23 = vadd.f32 %v2191_v16, %v1315_v38 }
 0x22c   : > { %v1180_v18 = vsel %vm1179_vm14, %v1677_v14, %v1176_v51  ;;  %v1188_v44 = vmul.f32 %v1681_v39, %v2188_v9  ;;  %1682 = vpow2.f32 %v1539_v36  ;;  %1332 = vadd.xlane.f32.xlu2 %v1307_v43  ;;  %vm1193_vm0 = vweird.f32 %v1681_v39 }
 0x22d   : > { %v1185_v45 = vsel %vm1182_vm15, %v1184_v12, %v1180_v18  ;;  %1684 = vrcp.f32 %v1018_v3  ;;  %1367 = vst.msk [vmem:[%s2206_s22] sm:$0xff] %vm1366_vm12, %v1350_v23  ;;  %vm1194_vm2 = vmor %vm1192_vm1, %vm1193_vm0  ;;  %v1213_v10 = vand.u32 2147483648, %v1018_v3  ;;  %v1211_v14 = vand.u32 2147483647, %v1018_v3 }
 0x22e   : > { %v1272_v49 = vmul.f32 %v1185_v45, %v2175_v48  ;;  %v1189_v50 = vsub.f32 1.0, %v1188_v44  ;;  %1686 = vpow2.f32 %v1540_v37  ;;  %vm1207_vm5 = vweird.f32 %v1018_v3 }
 0x22f   : > { %v955_v52 = vpop.f32.mrf.mxu3  ;;  %v1214_v21 = vor.u32 1.1754944e-38, %v1213_v10  ;;  %vm1212_vm7 = vcmp.eq.f32.partialorder %v1211_v14, 8.507059e+37 }
 0x230   : > { %v1190_v54 = vmul.f32 %v1681_v39, %v1189_v50  ;;  %v2217_v55 = vadd.f32 %v2097_v26, %v955_v52  ;;  %v1288_v0 = vadd.f32 %v1272_v49, %v2091_v25 }
 0x232   : > { %v1683_v61 = vpop.eup %1682  ;;  %v1191_v1 = vadd.f32 %v1681_v39, %v1190_v54  ;;  %v1541_v48 = vmul.f32 -1.442695, %v2217_v55  ;;  %v1317_v58 = vpop.xlane.xlu1 %1316  ;;  %v1308_v59 = vmul.f32 %v2135_v7, %v1288_v0 }
 0x233   : > { %v1685_v60 = vpop.eup %1684  ;;  %v1019_v63 = vadd.f32 1.0, %v1683_v61  ;;  %v1351_v46 = vadd.f32 %v2191_v16, %v1317_v58 }
 0x234   : > { %v1687_v26 = vpop.eup %1686  ;;  %v1195_v2 = vsel %vm1194_vm2, %v1681_v39, %v1191_v1  ;;  %v1203_v25 = vmul.f32 %v1685_v60, %v1018_v3  ;;  %1688 = vpow2.f32 %v1541_v48  ;;  %1334 = vadd.xlane.f32.xlu0 %v1308_v59  ;;  %vm1208_vm3 = vweird.f32 %v1685_v60 }
 0x235   : > { %v1200_v5 = vsel %vm1197_vm4, %v1199_v62, %v1195_v2  ;;  %1690 = vrcp.f32 %v1019_v63  ;;  %1368 = vst.msk [vmem:[%s2206_s22 + $0x8] sm:$0xff] %vm1366_vm12, %v1351_v46  ;;  %v1020_v47 = vadd.f32 1.0, %v1687_v26  ;;  %vm1209_vm6 = vmor %vm1207_vm5, %vm1208_vm3  ;;  %v1228_v57 = vand.u32 2147483648, %v1019_v63 }
 0x236   : > { %v1273_v6 = vmul.f32 %v1200_v5, %v2180_v56  ;;  %v1204_v20 = vsub.f32 1.0, %v1203_v25  ;;  %v1226_v37 = vand.u32 2147483647, %v1019_v63  ;;  %vm1222_vm9 = vweird.f32 %v1019_v63 }
 0x237   : > { %1692 = vrcp.f32 %v1020_v47  ;;  %v1229_v3 = vor.u32 1.1754944e-38, %v1228_v57  ;;  %v1243_v23 = vand.u32 2147483648, %v1020_v47  ;;  %v1241_v45 = vand.u32 2147483647, %v1020_v47 }
 0x238   : > { %v1205_v11 = vmul.f32 %v1685_v60, %v1204_v20  ;;  %v1289_v13 = vadd.f32 %v1273_v6, %v2100_v28  ;;  %vm1227_vm13 = vcmp.eq.f32.partialorder %v1226_v37, 8.507059e+37  ;;  %vm1237_vm14 = vweird.f32 %v1020_v47 }
 0x239   : > { %v1244_v54 = vor.u32 1.1754944e-38, %v1243_v23  ;;  %vm1242_vm0 = vcmp.eq.f32.partialorder %v1241_v45, 8.507059e+37 }
 0x23a   : > { %v1689_v9 = vpop.eup %1688  ;;  %v1206_v8 = vadd.f32 %v1685_v60, %v1205_v11  ;;  %v1319_v17 = vpop.xlane.xlu0 %1318  ;;  %v1309_v27 = vmul.f32 %v2135_v7, %v1289_v13 }
 0x23b   : > { %v1691_v19 = vpop.eup %1690  ;;  %v2228_v22 = vadd.f32 1.0, %v1689_v9  ;;  %v1352_v56 = vadd.f32 %v2191_v16, %v1319_v17 }
 0x23c   : > { %v1210_v24 = vsel %vm1209_vm6, %v1685_v60, %v1206_v8  ;;  %v1218_v4 = vmul.f32 %v1691_v19, %v1019_v63  ;;  %1336 = vadd.xlane.f32.xlu1 %v1309_v27  ;;  %vm1223_vm8 = vweird.f32 %v1691_v19 }
 0x23d   : > { %v1215_v29 = vsel %vm1212_vm7, %v1214_v21, %v1210_v24  ;;  %1694 = vrcp.f32 %v2228_v22  ;;  %1369 = vst.msk [vmem:[%s2206_s22 + $0x10] sm:$0xff] %vm1366_vm12, %v1352_v56  ;;  %v1693_v28 = vpop.eup %1692  ;;  %vm1224_vm10 = vmor %vm1222_vm9, %vm1223_vm8  ;;  %v1256_v1 = vand.u32 2147483647, %v2228_v22  ;;  %v1258_v48 = vand.u32 2147483648, %v2228_v22 }
 0x23e   : > { %v1274_v30 = vmul.f32 %v1215_v29, %v2185_v42  ;;  %v1219_v34 = vsub.f32 1.0, %v1218_v4  ;;  %v1233_v51 = vmul.f32 %v1693_v28, %v1020_v47  ;;  %vm1238_vm11 = vweird.f32 %v1693_v28 }
 0x23f   : > { %vm1239_vm15 = vmor %vm1237_vm14, %vm1238_vm11  ;;  %vm1252_vm2 = vweird.f32 %v2228_v22  ;;  %v1259_v26 = vor.u32 1.1754944e-38, %v1258_v48  ;;  %vm1257_vm3 = vcmp.eq.f32.partialorder %v1256_v1, 8.507059e+37 }
 0x240   : > { %v1220_v36 = vmul.f32 %v1691_v19, %v1219_v34  ;;  %v1290_v38 = vadd.f32 %v1274_v30, %v2105_v33  ;;  %v1234_v39 = vsub.f32 1.0, %v1233_v51 }
 0x242   : > { %v1221_v12 = vadd.f32 %v1691_v19, %v1220_v36  ;;  %v1321_v43 = vpop.xlane.xlu2 %1320  ;;  %v1310_v18 = vmul.f32 %v2135_v7, %v1290_v38  ;;  %v1235_v42 = vmul.f32 %v1693_v28, %v1234_v39 }
 0x243   : > { %v1695_v44 = vpop.eup %1694  ;;  %v1353_v49 = vadd.f32 %v2191_v16, %v1321_v43 }
 0x244   : > { %v1225_v50 = vsel %vm1224_vm10, %v1691_v19, %v1221_v12  ;;  %v1248_v33 = vmul.f32 %v1695_v44, %v2228_v22  ;;  %1338 = vadd.xlane.f32.xlu2 %v1310_v18  ;;  %v1236_v15 = vadd.f32 %v1693_v28, %v1235_v42  ;;  %vm1253_vm1 = vweird.f32 %v1695_v44 }
 0x245   : > { %v1230_v35 = vsel %vm1227_vm13, %v1229_v3, %v1225_v50  ;;  %1370 = vst.msk [vmem:[%s2206_s22 + $0x18] sm:$0xff] %vm1366_vm12, %v1353_v49  ;;  %vm1254_vm4 = vmor %vm1252_vm2, %vm1253_vm1 }
 0x246   : > { %v1275_v52 = vmul.f32 %v1230_v35, %v2194_v31  ;;  %v1249_v0 = vsub.f32 1.0, %v1248_v33  ;;  %v1240_v61 = vsel %vm1239_vm15, %v1693_v28, %v1236_v15 }
 0x247   : > { %v1245_v58 = vsel %vm1242_vm0, %v1244_v54, %v1240_v61 }
 0x248   : > { %v1250_v59 = vmul.f32 %v1695_v44, %v1249_v0  ;;  %v1291_v60 = vadd.f32 %v1275_v52, %v2113_v40  ;;  %v1276_v62 = vmul.f32 %v1245_v58, %v2197_v32 }
 0x24a   : > { %v1251_v63 = vadd.f32 %v1695_v44, %v1250_v59  ;;  %v1323_v31 = vpop.xlane.xlu2 %1322  ;;  %v1311_v46 = vmul.f32 %v2135_v7, %v1291_v60  ;;  %v1292_v25 = vadd.f32 %v1276_v62, %v2116_v41 }
 0x24b   : > { %v1354_v2 = vadd.f32 %v2191_v16, %v1323_v31 }
 0x24c   : > { %v1255_v5 = vsel %vm1254_vm4, %v1695_v44, %v1251_v63  ;;  %1340 = vadd.xlane.f32.xlu0 %v1311_v46  ;;  %v1312_v32 = vmul.f32 %v2135_v7, %v1292_v25 }
 0x24d   : > { %v1260_v40 = vsel %vm1257_vm3, %v1259_v26, %v1255_v5  ;;  %1371 = vst.msk [vmem:[%s2206_s22 + $0x20] sm:$0xff] %vm1366_vm12, %v1354_v2 }
 0x24e   : > { %v1277_v6 = vmul.f32 %v1260_v40, %v2217_v55  ;;  %1342 = vadd.xlane.f32.xlu1 %v1312_v32 }
 0x250   : > { %v1293_v20 = vadd.f32 %v1277_v6, %v2125_v53 }
 0x252   : > { %v1313_v47 = vmul.f32 %v2135_v7, %v1293_v20 }
 0x254   : > { %v1325_v41 = vpop.xlane.xlu1 %1324  ;;  %1344 = vadd.xlane.f32.xlu2 %v1313_v47 }
 0x255   : > { %v1355_v10 = vadd.f32 %v2191_v16, %v1325_v41 }
 0x257   : > { %1372 = vst.msk [vmem:[%s2206_s22 + $0x28] sm:$0xff] %vm1366_vm12, %v1355_v10 }
 0x25c   : > { %v1327_v11 = vpop.xlane.xlu2 %1326 }
 0x25d   : > { %v1356_v14 = vadd.f32 %v2191_v16, %v1327_v11 }
 0x25f   : > { %1373 = vst.msk [vmem:[%s2206_s22 + $0x30] sm:$0xff] %vm1366_vm12, %v1356_v14 }
 0x26d   : > { %v1329_v55 = vpop.xlane.xlu0 %1328 }
 0x26e   : > { %v1357_v13 = vadd.f32 %v2191_v16, %v1329_v55 }
 0x270   : > { %1374 = vst.msk [vmem:[%s2206_s22 + $0x38] sm:$0xff] %vm1366_vm12, %v1357_v13 }
 0x28d   : > { %v1331_v53 = vpop.xlane.xlu1 %1330 }
 0x28e   : > { %v1358_v7 = vadd.f32 %v2191_v16, %v1331_v53 }
 0x290   : > { %1375 = vst.msk [vmem:[%s2206_s22 + $0x40] sm:$0xff] %vm1366_vm12, %v1358_v7 }
 0x29f   : > { %v1333_v9 = vpop.xlane.xlu2 %1332 }
 0x2a0   : > { %v1359_v8 = vadd.f32 %v2191_v16, %v1333_v9 }
 0x2a2   : > { %1376 = vst.msk [vmem:[%s2206_s22 + $0x48] sm:$0xff] %vm1366_vm12, %v1359_v8 }
 0x2a7   : > { %v1335_v17 = vpop.xlane.xlu0 %1334 }
 0x2a8   : > { %v1360_v19 = vadd.f32 %v2191_v16, %v1335_v17 }
 0x2aa   : > { %1377 = vst.msk [vmem:[%s2206_s22 + $0x50] sm:$0xff] %vm1366_vm12, %v1360_v19 }
 0x2af   : > { %v1337_v21 = vpop.xlane.xlu1 %1336 }
 0x2b0   : > { %v1361_v22 = vadd.f32 %v2191_v16, %v1337_v21 }
 0x2b2   : > { %1378 = vst.msk [vmem:[%s2206_s22 + $0x58] sm:$0xff] %vm1366_vm12, %v1361_v22 }
 0x2b7   : > { %v1339_v56 = vpop.xlane.xlu2 %1338 }
 0x2b8   : > { %v1362_v24 = vadd.f32 %v2191_v16, %v1339_v56 }
 0x2ba   : > { %1379 = vst.msk [vmem:[%s2206_s22 + $0x60] sm:$0xff] %vm1366_vm12, %v1362_v24 }
 0x2bf   : > { %v1341_v4 = vpop.xlane.xlu0 %1340 }
 0x2c0   : > { %v1363_v27 = vadd.f32 %v2191_v16, %v1341_v4 }
 0x2c1   : > { %v1343_v29 = vpop.xlane.xlu1 %1342 }
 0x2c2   : > { %1380 = vst.msk [vmem:[%s2206_s22 + $0x68] sm:$0xff] %vm1366_vm12, %v1363_v27  ;;  %v1364_v28 = vadd.f32 %v2191_v16, %v1343_v29 }
 0x2c4   : > { %1381 = vst.msk [vmem:[%s2206_s22 + $0x70] sm:$0xff] %vm1366_vm12, %v1364_v28 }
 0x2c7   : > { %v1345_v30 = vpop.xlane.xlu2 %1344 }
 0x2c8   : > { %v1365_v34 = vadd.f32 %v2191_v16, %v1345_v30 }
 0x2ca   : > { %1382 = vst.msk [vmem:[%s2206_s22 + $0x78] sm:$0xff] %vm1366_vm12, %v1365_v34 }
 0x2cb PF: > { %s20_s29 = sadd.s32 1, %s1702_s29  }
 0x2cc   : > { %p17_p4 = scmp.ge.s32.totalorder %s20_s29, 4  }
 0x2ce   :  { %19 = sbr.rel (!%p17_p4) target bundleno = 3 (0x3), region = 85 }

</bundles_post_ra>
